<compile_context>
chip_gen: v5e
topology: v5e:2x2
jax: 0.10.0
libtpu: 0.0.40
codegen_flags: <defaults>
</compile_context>

<pallas_src>
import jax
import jax.numpy as jnp
from jax.experimental import pallas as pl
from jax.experimental.pallas import tpu as pltpu


# --------------------------------------------------------------------------
# Pallas kernels
# --------------------------------------------------------------------------
def _conv_relu_pool_kernel(p_ref, w_ref, b_ref, o_ref):
    """Fused conv3x3(pad=1) -> ReLU -> maxpool2x2 for one batch sample.

    p_ref: (1, 4, M, K)  bf16 im2col patches; slab j holds the patches of the
                         conv outputs sitting at pool position j of each 2x2
                         pooling window (M = Ho*Wo pooled pixels, K = 9*Cin).
    w_ref: (K, Cout)     bf16 conv weights reshaped for matmul.
    b_ref: (1, Cout)     f32 conv bias.
    o_ref: (1, M, Cout)  f32 pooled output.
    """
    w = w_ref[...]
    # Max over the 4 raw matmul results first; bias + ReLU applied only once
    # afterwards (bit-exact: relu(max_j z_j + b) == max_j relu(z_j + b)).
    z = jnp.dot(p_ref[0, 0], w, preferred_element_type=jnp.float32)
    for j in range(1, 4):  # static unrolled loop over the 4 pool positions
        z = jnp.maximum(
            z, jnp.dot(p_ref[0, j], w, preferred_element_type=jnp.float32))
    o_ref[0] = jnp.maximum(z + b_ref[...], 0.0).astype(o_ref.dtype)


def _mlp_kernel(x_ref, w1_ref, b1_ref, w2_ref, b2_ref, o_ref):
    """relu(fc2(relu(fc1(x)))) fused in one kernel (bf16 weights, f32 accum)."""
    h = jnp.dot(x_ref[...], w1_ref[...],
                preferred_element_type=jnp.float32) + b1_ref[...]
    h = jnp.maximum(h, 0.0)
    o = jnp.dot(h.astype(w2_ref.dtype), w2_ref[...],
                preferred_element_type=jnp.float32) + b2_ref[...]
    o_ref[...] = jnp.maximum(o, 0.0).astype(o_ref.dtype)


# --------------------------------------------------------------------------
# Glue (pure data movement / parameter plumbing)
# --------------------------------------------------------------------------
def _im2col_pool_groups(xp, H, W, Cin):
    """xp: zero-padded NHWC input (N, H+2, W+2, Cin) (already bf16).

    Returns (N, 4, Ho*Wo, 9*Cin) patches, where axis 1 enumerates the 4
    positions of each 2x2 max-pool window (Ho = H//2, Wo = W//2).
    """
    Ho, Wo = H // 2, W // 2
    groups = []
    for py in range(2):
        for px in range(2):
            taps = []
            for dy in range(3):
                for dx in range(3):
                    win = xp[:, py + dy: py + dy + H: 2,
                             px + dx: px + dx + W: 2, :]   # (N, Ho, Wo, Cin)
                    taps.append(win)
            g = jnp.concatenate(taps, axis=-1)              # (N, Ho, Wo, 9*Cin)
            groups.append(g.reshape(g.shape[0], Ho * Wo, 9 * Cin))
    return jnp.stack(groups, axis=1)                        # (N, 4, Ho*Wo, 9*Cin)


def conv3x3_relu_maxpool(x_nhwc, w_kc, b_1c):
    """x: (N, H, W, Cin) f32, w_kc: (9*Cin, Cout) bf16, b_1c: (1, Cout) f32.

    Returns (N, H//2, W//2, Cout) f32.
    """
    N, H, W, Cin = x_nhwc.shape
    assert H % 2 == 0 and W % 2 == 0, "even spatial dims assumed (28x28 path)"
    Cout = w_kc.shape[-1]
    Ho, Wo = H // 2, W // 2
    M, K = Ho * Wo, 9 * Cin

    # bf16 patches: halves HBM<->VMEM bytes for the 9x-expanded tensor and
    # feeds the native bf16 MXU path; accumulation stays f32 in-kernel.
    xb = x_nhwc.astype(jnp.bfloat16)
    xp = jnp.pad(xb, ((0, 0), (1, 1), (1, 1), (0, 0)))
    patches = _im2col_pool_groups(xp, H, W, Cin)            # (N, 4, M, K) bf16
    # TODO(synk): in-kernel im2col (full padded tile + 9 shifted-tap dots)
    # would remove this HBM round-trip but risks strided in-kernel relayouts.

    flops = 2 * N * 4 * M * K * Cout
    bytes_accessed = (patches.size * 2 + w_kc.size * 2
                      + b_1c.size * 4 + N * M * Cout * 4)

    out = pl.pallas_call(
        _conv_relu_pool_kernel,
        out_shape=jax.ShapeDtypeStruct((N, M, Cout), jnp.float32),
        grid_spec=pltpu.PrefetchScalarGridSpec(
            num_scalar_prefetch=0,
            grid=(N,),
            in_specs=[
                pl.BlockSpec((1, 4, M, K), lambda n: (n, 0, 0, 0)),
                pl.BlockSpec((K, Cout), lambda n: (0, 0)),
                pl.BlockSpec((1, Cout), lambda n: (0, 0)),
            ],
            out_specs=pl.BlockSpec((1, M, Cout), lambda n: (n, 0, 0)),
        ),
        compiler_params=pltpu.CompilerParams(
            dimension_semantics=("parallel",)),
        cost_estimate=pl.CostEstimate(flops=flops, transcendentals=0,
                                      bytes_accessed=bytes_accessed),
    )(patches, w_kc, b_1c)
    return out.reshape(N, Ho, Wo, Cout)


def mlp_relu(x, w1, b1, w2, b2):
    """relu(fc2(relu(fc1(x)))) via a single Pallas call.

    x: (N, D) bf16; w1: (D, Hd) bf16; b1: (1, Hd) f32; w2: (Hd, O) bf16;
    b2: (1, O) f32.  Output (N, O) f32.
    """
    N, D = x.shape
    Hd = w1.shape[1]
    O = w2.shape[1]
    flops = 2 * N * D * Hd + 2 * N * Hd * O
    bytes_accessed = x.size * 2 + w1.size * 2 + w2.size * 2 + (Hd + O) * 4 + N * O * 4
    return pl.pallas_call(
        _mlp_kernel,
        out_shape=jax.ShapeDtypeStruct((N, O), jnp.float32),
        grid_spec=pltpu.PrefetchScalarGridSpec(
            num_scalar_prefetch=0,
            grid=(1,),
            in_specs=[
                pl.BlockSpec((N, D), lambda i: (0, 0)),
                pl.BlockSpec((D, Hd), lambda i: (0, 0)),
                pl.BlockSpec((1, Hd), lambda i: (0, 0)),
                pl.BlockSpec((Hd, O), lambda i: (0, 0)),
                pl.BlockSpec((1, O), lambda i: (0, 0)),
            ],
            out_specs=pl.BlockSpec((N, O), lambda i: (0, 0)),
        ),
        compiler_params=pltpu.CompilerParams(
            dimension_semantics=("arbitrary",)),
        cost_estimate=pl.CostEstimate(flops=flops, transcendentals=0,
                                      bytes_accessed=bytes_accessed),
    )(x, w1, b1, w2, b2)


def adaptive_avg_pool_nhwc(x, out_hw):
    """torch.nn.AdaptiveAvgPool2d semantics (identity when input is 7x7)."""
    N, H, W, C = x.shape
    oh, ow = out_hw
    if (H, W) == (oh, ow):
        return x
    # General path kept in plain JAX (never hit for the 28x28 input).
    rows = []
    for i in range(oh):
        h0, h1 = (i * H) // oh, -(-((i + 1) * H) // oh)
        cols = []
        for j in range(ow):
            w0, w1 = (j * W) // ow, -(-((j + 1) * W) // ow)
            cols.append(jnp.mean(x[:, h0:h1, w0:w1, :], axis=(1, 2)))
        rows.append(jnp.stack(cols, axis=1))
    return jnp.stack(rows, axis=1)


# --------------------------------------------------------------------------
# Model: ClassicalCNN forward
# --------------------------------------------------------------------------
def init_params(key):
    """PyTorch-analogous fp32 parameters (conv weights in HWIO layout)."""
    ks = jax.random.split(key, 8)
    return {
        "conv1_w": 0.10 * jax.random.normal(ks[0], (3, 3, 1, 32), jnp.float32),
        "conv1_b": 0.10 * jax.random.normal(ks[1], (32,), jnp.float32),
        "conv2_w": 0.05 * jax.random.normal(ks[2], (3, 3, 32, 64), jnp.float32),
        "conv2_b": 0.10 * jax.random.normal(ks[3], (64,), jnp.float32),
        "fc1_w": 0.02 * jax.random.normal(ks[4], (64 * 7 * 7, 128), jnp.float32),
        "fc1_b": 0.10 * jax.random.normal(ks[5], (128,), jnp.float32),
        "fc2_w": 0.05 * jax.random.normal(ks[6], (128, 64), jnp.float32),
        "fc2_b": 0.10 * jax.random.normal(ks[7], (64,), jnp.float32),
    }


def prepare_params(params):
    """One-time reshape / cast / row-permutation of the parameters.

    - conv weights -> (9*Cin, Cout) bf16 matmul matrices, biases -> (1, Cout) f32
    - fc1 rows permuted from CHW order (PyTorch view(B,-1)) to HWC order so the
      forward flattens the NHWC activation contiguously (no runtime transpose).
    """
    C, H, W = 64, 7, 7
    Hd = params["fc1_w"].shape[1]
    fc1_w_hwc = (params["fc1_w"].reshape(C, H, W, Hd)
                 .transpose(1, 2, 0, 3).reshape(H * W * C, Hd))
    return {
        "conv1_w": params["conv1_w"].reshape(9 * 1, 32).astype(jnp.bfloat16),
        "conv1_b": params["conv1_b"].reshape(1, 32).astype(jnp.float32),
        "conv2_w": params["conv2_w"].reshape(9 * 32, 64).astype(jnp.bfloat16),
        "conv2_b": params["conv2_b"].reshape(1, 64).astype(jnp.float32),
        "fc1_w": fc1_w_hwc.astype(jnp.bfloat16),
        "fc1_b": params["fc1_b"].reshape(1, Hd).astype(jnp.float32),
        "fc2_w": params["fc2_w"].astype(jnp.bfloat16),
        "fc2_b": params["fc2_b"].reshape(1, -1).astype(jnp.float32),
    }


@jax.jit
def classical_cnn_forward(prepared, x_nchw):
    # NCHW (PyTorch) -> NHWC for the kernels
    x = jnp.transpose(x_nchw, (0, 2, 3, 1)).astype(jnp.float32)
    x = conv3x3_relu_maxpool(x, prepared["conv1_w"], prepared["conv1_b"])   # (N,14,14,32)
    x = conv3x3_relu_maxpool(x, prepared["conv2_w"], prepared["conv2_b"])   # (N, 7, 7,64)
    x = adaptive_avg_pool_nhwc(x, (7, 7))                                    # (N, 7, 7,64)
    # HWC-contiguous flatten; fc1_w rows were pre-permuted to match PyTorch's
    # view(B,-1) (C,H,W) flatten order, so no runtime transpose is needed.
    N = x.shape[0]
    x = x.reshape(N, 7 * 7 * 64).astype(jnp.bfloat16)
    return mlp_relu(x, prepared["fc1_w"], prepared["fc1_b"],
                    prepared["fc2_w"], prepared["fc2_b"])                    # (N, 64)


if __name__ == "__main__":
    key = jax.random.PRNGKey(0)
    pkey, xkey = jax.random.split(key)
    params = init_params(pkey)
    prepared = prepare_params(params)
    # batch=2, 1 channel, 28x28 (so the 7x7 adaptive pool is the identity path)
    x = jax.random.normal(xkey, (2, 1, 28, 28), jnp.float32)

    out = classical_cnn_forward(prepared, x)
    out = jax.block_until_ready(out)
    assert out.shape == (2, 64) and out.dtype == jnp.float32
    print("KERNEL_OK")
</pallas_src>

<mosaic_0001>
module attributes {stable_mosaic.version = 11 : i64} {
  func.func @_conv_relu_pool_kernel(%arg0: i32, %arg1: memref<1x4x196x9xbf16, #tpu.memory_space<vmem>>, %arg2: memref<9x32xbf16, #tpu.memory_space<vmem>>, %arg3: memref<1x32xf32, #tpu.memory_space<vmem>>, %arg4: memref<1x196x32xf32, #tpu.memory_space<vmem>>) attributes {dimension_semantics = [#tpu.dimension_semantics<parallel>], iteration_bounds = array<i64: 2>, scalar_prefetch = 0 : i64, scratch_operands = 0 : i64, tpu.core_type = #tpu.core_type<tc>, window_params = [{transform_indices = @transform_0, window_bounds = array<i64: 1, 4, 196, 9>}, {pipeline_mode = #tpu.pipeline_mode<synchronous>, transform_indices = @transform_1, window_bounds = array<i64: 9, 32>}, {pipeline_mode = #tpu.pipeline_mode<synchronous>, transform_indices = @transform_2, window_bounds = array<i64: 1, 32>}, {transform_indices = @transform_3, window_bounds = array<i64: 1, 196, 32>}]} {
    %c0 = arith.constant 0 : index
    %c0_0 = arith.constant 0 : index
    %0 = vector.load %arg2[%c0, %c0_0] : memref<9x32xbf16, #tpu.memory_space<vmem>>, vector<9x32xbf16>
    %c0_1 = arith.constant 0 : index
    %c0_2 = arith.constant 0 : index
    %c0_3 = arith.constant 0 : index
    %c0_4 = arith.constant 0 : index
    %1 = vector.load %arg1[%c0_1, %c0_2, %c0_3, %c0_4] : memref<1x4x196x9xbf16, #tpu.memory_space<vmem>>, vector<1x1x196x9xbf16>
    %2 = vector.shape_cast %1 : vector<1x1x196x9xbf16> to vector<196x9xbf16>
    %cst = arith.constant dense<0.000000e+00> : vector<196x32xf32>
    %3 = tpu.matmul %2, %0, %cst {dimension_numbers = #tpu.dot_dimension_numbers<[1], [0], [0], [1], [0, 0, 1, 1], [], []>} : vector<196x9xbf16>, vector<9x32xbf16>, vector<196x32xf32> -> vector<196x32xf32>
    %c0_5 = arith.constant 0 : index
    %c1 = arith.constant 1 : index
    %c0_6 = arith.constant 0 : index
    %c0_7 = arith.constant 0 : index
    %4 = vector.load %arg1[%c0_5, %c1, %c0_6, %c0_7] : memref<1x4x196x9xbf16, #tpu.memory_space<vmem>>, vector<1x1x196x9xbf16>
    %5 = vector.shape_cast %4 : vector<1x1x196x9xbf16> to vector<196x9xbf16>
    %cst_8 = arith.constant dense<0.000000e+00> : vector<196x32xf32>
    %6 = tpu.matmul %5, %0, %cst_8 {dimension_numbers = #tpu.dot_dimension_numbers<[1], [0], [0], [1], [0, 0, 1, 1], [], []>} : vector<196x9xbf16>, vector<9x32xbf16>, vector<196x32xf32> -> vector<196x32xf32>
    %7 = arith.maximumf %3, %6 : vector<196x32xf32>
    %c0_9 = arith.constant 0 : index
    %c2 = arith.constant 2 : index
    %c0_10 = arith.constant 0 : index
    %c0_11 = arith.constant 0 : index
    %8 = vector.load %arg1[%c0_9, %c2, %c0_10, %c0_11] : memref<1x4x196x9xbf16, #tpu.memory_space<vmem>>, vector<1x1x196x9xbf16>
    %9 = vector.shape_cast %8 : vector<1x1x196x9xbf16> to vector<196x9xbf16>
    %cst_12 = arith.constant dense<0.000000e+00> : vector<196x32xf32>
    %10 = tpu.matmul %9, %0, %cst_12 {dimension_numbers = #tpu.dot_dimension_numbers<[1], [0], [0], [1], [0, 0, 1, 1], [], []>} : vector<196x9xbf16>, vector<9x32xbf16>, vector<196x32xf32> -> vector<196x32xf32>
    %11 = arith.maximumf %7, %10 : vector<196x32xf32>
    %c0_13 = arith.constant 0 : index
    %c3 = arith.constant 3 : index
    %c0_14 = arith.constant 0 : index
    %c0_15 = arith.constant 0 : index
    %12 = vector.load %arg1[%c0_13, %c3, %c0_14, %c0_15] : memref<1x4x196x9xbf16, #tpu.memory_space<vmem>>, vector<1x1x196x9xbf16>
    %13 = vector.shape_cast %12 : vector<1x1x196x9xbf16> to vector<196x9xbf16>
    %cst_16 = arith.constant dense<0.000000e+00> : vector<196x32xf32>
    %14 = tpu.matmul %13, %0, %cst_16 {dimension_numbers = #tpu.dot_dimension_numbers<[1], [0], [0], [1], [0, 0, 1, 1], [], []>} : vector<196x9xbf16>, vector<9x32xbf16>, vector<196x32xf32> -> vector<196x32xf32>
    %15 = arith.maximumf %11, %14 : vector<196x32xf32>
    %c0_17 = arith.constant 0 : index
    %c0_18 = arith.constant 0 : index
    %16 = vector.load %arg3[%c0_17, %c0_18] : memref<1x32xf32, #tpu.memory_space<vmem>>, vector<1x32xf32>
    %17 = vector.broadcast %16 : vector<1x32xf32> to vector<196x32xf32>
    %18 = arith.addf %15, %17 : vector<196x32xf32>
    %cst_19 = arith.constant 0.000000e+00 : f32
    %19 = vector.broadcast %cst_19 : f32 to vector<196x32xf32>
    %20 = arith.maximumf %18, %19 : vector<196x32xf32>
    %c0_20 = arith.constant 0 : index
    %c0_21 = arith.constant 0 : index
    %c0_22 = arith.constant 0 : index
    %21 = vector.load %arg4[%c0_20, %c0_21, %c0_22] : memref<1x196x32xf32, #tpu.memory_space<vmem>>, vector<1x196x32xf32>
    %22 = vector.shape_cast %21 : vector<1x196x32xf32> to vector<196x32xf32>
    %23 = vector.shape_cast %20 : vector<196x32xf32> to vector<1x196x32xf32>
    tpu.vector_store %arg4[%c0_20, %c0_21, %c0_22], %23 {strides = array<i32>} : memref<1x196x32xf32, #tpu.memory_space<vmem>>, vector<1x196x32xf32>,
    return
  }
  func.func @transform_0(%arg0: i32) -> (i32, i32, i32, i32) {
    %c0_i32 = arith.constant 0 : i32
    %c0_i32_0 = arith.constant 0 : i32
    %c0_i32_1 = arith.constant 0 : i32
    %c0_i32_2 = arith.constant 0 : i32
    return %arg0, %c0_i32, %c0_i32_0, %c0_i32_1 : i32, i32, i32, i32
  }
  func.func @transform_1(%arg0: i32) -> (i32, i32) {
    %c0_i32 = arith.constant 0 : i32
    %c0_i32_0 = arith.constant 0 : i32
    %c0_i32_1 = arith.constant 0 : i32
    return %c0_i32, %c0_i32_0 : i32, i32
  }
  func.func @transform_2(%arg0: i32) -> (i32, i32) {
    %c0_i32 = arith.constant 0 : i32
    %c0_i32_0 = arith.constant 0 : i32
    %c0_i32_1 = arith.constant 0 : i32
    return %c0_i32, %c0_i32_0 : i32, i32
  }
  func.func @transform_3(%arg0: i32) -> (i32, i32, i32) {
    %c0_i32 = arith.constant 0 : i32
    %c0_i32_0 = arith.constant 0 : i32
    %c0_i32_1 = arith.constant 0 : i32
    return %arg0, %c0_i32, %c0_i32_0 : i32, i32, i32
  }
}

module attributes {stable_mosaic.version = 11 : i64} {
  func.func @_conv_relu_pool_kernel(%arg0: i32, %arg1: memref<1x4x49x288xbf16, #tpu.memory_space<vmem>>, %arg2: memref<288x64xbf16, #tpu.memory_space<vmem>>, %arg3: memref<1x64xf32, #tpu.memory_space<vmem>>, %arg4: memref<1x49x64xf32, #tpu.memory_space<vmem>>) attributes {dimension_semantics = [#tpu.dimension_semantics<parallel>], iteration_bounds = array<i64: 2>, scalar_prefetch = 0 : i64, scratch_operands = 0 : i64, tpu.core_type = #tpu.core_type<tc>, window_params = [{transform_indices = @transform_0, window_bounds = array<i64: 1, 4, 49, 288>}, {pipeline_mode = #tpu.pipeline_mode<synchronous>, transform_indices = @transform_1, window_bounds = array<i64: 288, 64>}, {pipeline_mode = #tpu.pipeline_mode<synchronous>, transform_indices = @transform_2, window_bounds = array<i64: 1, 64>}, {transform_indices = @transform_3, window_bounds = array<i64: 1, 49, 64>}]} {
    %c0 = arith.constant 0 : index
    %c0_0 = arith.constant 0 : index
    %0 = vector.load %arg2[%c0, %c0_0] : memref<288x64xbf16, #tpu.memory_space<vmem>>, vector<288x64xbf16>
    %c0_1 = arith.constant 0 : index
    %c0_2 = arith.constant 0 : index
    %c0_3 = arith.constant 0 : index
    %c0_4 = arith.constant 0 : index
    %1 = vector.load %arg1[%c0_1, %c0_2, %c0_3, %c0_4] : memref<1x4x49x288xbf16, #tpu.memory_space<vmem>>, vector<1x1x49x288xbf16>
    %2 = vector.shape_cast %1 : vector<1x1x49x288xbf16> to vector<49x288xbf16>
    %cst = arith.constant dense<0.000000e+00> : vector<49x64xf32>
    %3 = tpu.matmul %2, %0, %cst {dimension_numbers = #tpu.dot_dimension_numbers<[1], [0], [0], [1], [0, 0, 1, 1], [], []>} : vector<49x288xbf16>, vector<288x64xbf16>, vector<49x64xf32> -> vector<49x64xf32>
    %c0_5 = arith.constant 0 : index
    %c1 = arith.constant 1 : index
    %c0_6 = arith.constant 0 : index
    %c0_7 = arith.constant 0 : index
    %4 = vector.load %arg1[%c0_5, %c1, %c0_6, %c0_7] : memref<1x4x49x288xbf16, #tpu.memory_space<vmem>>, vector<1x1x49x288xbf16>
    %5 = vector.shape_cast %4 : vector<1x1x49x288xbf16> to vector<49x288xbf16>
    %cst_8 = arith.constant dense<0.000000e+00> : vector<49x64xf32>
    %6 = tpu.matmul %5, %0, %cst_8 {dimension_numbers = #tpu.dot_dimension_numbers<[1], [0], [0], [1], [0, 0, 1, 1], [], []>} : vector<49x288xbf16>, vector<288x64xbf16>, vector<49x64xf32> -> vector<49x64xf32>
    %7 = arith.maximumf %3, %6 : vector<49x64xf32>
    %c0_9 = arith.constant 0 : index
    %c2 = arith.constant 2 : index
    %c0_10 = arith.constant 0 : index
    %c0_11 = arith.constant 0 : index
    %8 = vector.load %arg1[%c0_9, %c2, %c0_10, %c0_11] : memref<1x4x49x288xbf16, #tpu.memory_space<vmem>>, vector<1x1x49x288xbf16>
    %9 = vector.shape_cast %8 : vector<1x1x49x288xbf16> to vector<49x288xbf16>
    %cst_12 = arith.constant dense<0.000000e+00> : vector<49x64xf32>
    %10 = tpu.matmul %9, %0, %cst_12 {dimension_numbers = #tpu.dot_dimension_numbers<[1], [0], [0], [1], [0, 0, 1, 1], [], []>} : vector<49x288xbf16>, vector<288x64xbf16>, vector<49x64xf32> -> vector<49x64xf32>
    %11 = arith.maximumf %7, %10 : vector<49x64xf32>
    %c0_13 = arith.constant 0 : index
    %c3 = arith.constant 3 : index
    %c0_14 = arith.constant 0 : index
    %c0_15 = arith.constant 0 : index
    %12 = vector.load %arg1[%c0_13, %c3, %c0_14, %c0_15] : memref<1x4x49x288xbf16, #tpu.memory_space<vmem>>, vector<1x1x49x288xbf16>
    %13 = vector.shape_cast %12 : vector<1x1x49x288xbf16> to vector<49x288xbf16>
    %cst_16 = arith.constant dense<0.000000e+00> : vector<49x64xf32>
    %14 = tpu.matmul %13, %0, %cst_16 {dimension_numbers = #tpu.dot_dimension_numbers<[1], [0], [0], [1], [0, 0, 1, 1], [], []>} : vector<49x288xbf16>, vector<288x64xbf16>, vector<49x64xf32> -> vector<49x64xf32>
    %15 = arith.maximumf %11, %14 : vector<49x64xf32>
    %c0_17 = arith.constant 0 : index
    %c0_18 = arith.constant 0 : index
    %16 = vector.load %arg3[%c0_17, %c0_18] : memref<1x64xf32, #tpu.memory_space<vmem>>, vector<1x64xf32>
    %17 = vector.broadcast %16 : vector<1x64xf32> to vector<49x64xf32>
    %18 = arith.addf %15, %17 : vector<49x64xf32>
    %cst_19 = arith.constant 0.000000e+00 : f32
    %19 = vector.broadcast %cst_19 : f32 to vector<49x64xf32>
    %20 = arith.maximumf %18, %19 : vector<49x64xf32>
    %c0_20 = arith.constant 0 : index
    %c0_21 = arith.constant 0 : index
    %c0_22 = arith.constant 0 : index
    %21 = vector.load %arg4[%c0_20, %c0_21, %c0_22] : memref<1x49x64xf32, #tpu.memory_space<vmem>>, vector<1x49x64xf32>
    %22 = vector.shape_cast %21 : vector<1x49x64xf32> to vector<49x64xf32>
    %23 = vector.shape_cast %20 : vector<49x64xf32> to vector<1x49x64xf32>
    tpu.vector_store %arg4[%c0_20, %c0_21, %c0_22], %23 {strides = array<i32>} : memref<1x49x64xf32, #tpu.memory_space<vmem>>, vector<1x49x64xf32>,
    return
  }
  func.func @transform_0(%arg0: i32) -> (i32, i32, i32, i32) {
    %c0_i32 = arith.constant 0 : i32
    %c0_i32_0 = arith.constant 0 : i32
    %c0_i32_1 = arith.constant 0 : i32
    %c0_i32_2 = arith.constant 0 : i32
    return %arg0, %c0_i32, %c0_i32_0, %c0_i32_1 : i32, i32, i32, i32
  }
  func.func @transform_1(%arg0: i32) -> (i32, i32) {
    %c0_i32 = arith.constant 0 : i32
    %c0_i32_0 = arith.constant 0 : i32
    %c0_i32_1 = arith.constant 0 : i32
    return %c0_i32, %c0_i32_0 : i32, i32
  }
  func.func @transform_2(%arg0: i32) -> (i32, i32) {
    %c0_i32 = arith.constant 0 : i32
    %c0_i32_0 = arith.constant 0 : i32
    %c0_i32_1 = arith.constant 0 : i32
    return %c0_i32, %c0_i32_0 : i32, i32
  }
  func.func @transform_3(%arg0: i32) -> (i32, i32, i32) {
    %c0_i32 = arith.constant 0 : i32
    %c0_i32_0 = arith.constant 0 : i32
    %c0_i32_1 = arith.constant 0 : i32
    return %arg0, %c0_i32, %c0_i32_0 : i32, i32, i32
  }
}

module attributes {stable_mosaic.version = 11 : i64} {
  func.func @_mlp_kernel(%arg0: i32, %arg1: memref<2x3136xbf16, #tpu.memory_space<vmem>>, %arg2: memref<3136x128xbf16, #tpu.memory_space<vmem>>, %arg3: memref<1x128xf32, #tpu.memory_space<vmem>>, %arg4: memref<128x64xbf16, #tpu.memory_space<vmem>>, %arg5: memref<1x64xf32, #tpu.memory_space<vmem>>, %arg6: memref<2x64xf32, #tpu.memory_space<vmem>>) attributes {dimension_semantics = [#tpu.dimension_semantics<arbitrary>], iteration_bounds = array<i64: 1>, scalar_prefetch = 0 : i64, scratch_operands = 0 : i64, tpu.core_type = #tpu.core_type<tc>, window_params = [{pipeline_mode = #tpu.pipeline_mode<synchronous>, transform_indices = @transform_0, window_bounds = array<i64: 2, 3136>}, {pipeline_mode = #tpu.pipeline_mode<synchronous>, transform_indices = @transform_1, window_bounds = array<i64: 3136, 128>}, {pipeline_mode = #tpu.pipeline_mode<synchronous>, transform_indices = @transform_2, window_bounds = array<i64: 1, 128>}, {pipeline_mode = #tpu.pipeline_mode<synchronous>, transform_indices = @transform_3, window_bounds = array<i64: 128, 64>}, {pipeline_mode = #tpu.pipeline_mode<synchronous>, transform_indices = @transform_4, window_bounds = array<i64: 1, 64>}, {pipeline_mode = #tpu.pipeline_mode<synchronous>, transform_indices = @transform_5, window_bounds = array<i64: 2, 64>}]} {
    %c0 = arith.constant 0 : index
    %c0_0 = arith.constant 0 : index
    %0 = vector.load %arg1[%c0, %c0_0] : memref<2x3136xbf16, #tpu.memory_space<vmem>>, vector<2x3136xbf16>
    %c0_1 = arith.constant 0 : index
    %c0_2 = arith.constant 0 : index
    %1 = vector.load %arg2[%c0_1, %c0_2] : memref<3136x128xbf16, #tpu.memory_space<vmem>>, vector<3136x128xbf16>
    %cst = arith.constant dense<0.000000e+00> : vector<2x128xf32>
    %2 = tpu.matmul %0, %1, %cst {dimension_numbers = #tpu.dot_dimension_numbers<[1], [0], [0], [1], [0, 0, 1, 1], [], []>} : vector<2x3136xbf16>, vector<3136x128xbf16>, vector<2x128xf32> -> vector<2x128xf32>
    %c0_3 = arith.constant 0 : index
    %c0_4 = arith.constant 0 : index
    %3 = vector.load %arg3[%c0_3, %c0_4] : memref<1x128xf32, #tpu.memory_space<vmem>>, vector<1x128xf32>
    %4 = vector.broadcast %3 : vector<1x128xf32> to vector<2x128xf32>
    %5 = arith.addf %2, %4 : vector<2x128xf32>
    %cst_5 = arith.constant 0.000000e+00 : f32
    %6 = vector.broadcast %cst_5 : f32 to vector<2x128xf32>
    %7 = arith.maximumf %5, %6 : vector<2x128xf32>
    %8 = arith.truncf %7 : vector<2x128xf32> to vector<2x128xbf16>
    %c0_6 = arith.constant 0 : index
    %c0_7 = arith.constant 0 : index
    %9 = vector.load %arg4[%c0_6, %c0_7] : memref<128x64xbf16, #tpu.memory_space<vmem>>, vector<128x64xbf16>
    %cst_8 = arith.constant dense<0.000000e+00> : vector<2x64xf32>
    %10 = tpu.matmul %8, %9, %cst_8 {dimension_numbers = #tpu.dot_dimension_numbers<[1], [0], [0], [1], [0, 0, 1, 1], [], []>} : vector<2x128xbf16>, vector<128x64xbf16>, vector<2x64xf32> -> vector<2x64xf32>
    %c0_9 = arith.constant 0 : index
    %c0_10 = arith.constant 0 : index
    %11 = vector.load %arg5[%c0_9, %c0_10] : memref<1x64xf32, #tpu.memory_space<vmem>>, vector<1x64xf32>
    %12 = vector.broadcast %11 : vector<1x64xf32> to vector<2x64xf32>
    %13 = arith.addf %10, %12 : vector<2x64xf32>
    %cst_11 = arith.constant 0.000000e+00 : f32
    %14 = vector.broadcast %cst_11 : f32 to vector<2x64xf32>
    %15 = arith.maximumf %13, %14 : vector<2x64xf32>
    %c0_12 = arith.constant 0 : index
    %c0_13 = arith.constant 0 : index
    %16 = vector.load %arg6[%c0_12, %c0_13] : memref<2x64xf32, #tpu.memory_space<vmem>>, vector<2x64xf32>
    tpu.vector_store %arg6[%c0_12, %c0_13], %15 {strides = array<i32>} : memref<2x64xf32, #tpu.memory_space<vmem>>, vector<2x64xf32>,
    return
  }
  func.func @transform_0(%arg0: i32) -> (i32, i32) {
    %c0_i32 = arith.constant 0 : i32
    %c0_i32_0 = arith.constant 0 : i32
    %c0_i32_1 = arith.constant 0 : i32
    return %c0_i32, %c0_i32_0 : i32, i32
  }
  func.func @transform_1(%arg0: i32) -> (i32, i32) {
    %c0_i32 = arith.constant 0 : i32
    %c0_i32_0 = arith.constant 0 : i32
    %c0_i32_1 = arith.constant 0 : i32
    return %c0_i32, %c0_i32_0 : i32, i32
  }
  func.func @transform_2(%arg0: i32) -> (i32, i32) {
    %c0_i32 = arith.constant 0 : i32
    %c0_i32_0 = arith.constant 0 : i32
    %c0_i32_1 = arith.constant 0 : i32
    return %c0_i32, %c0_i32_0 : i32, i32
  }
  func.func @transform_3(%arg0: i32) -> (i32, i32) {
    %c0_i32 = arith.constant 0 : i32
    %c0_i32_0 = arith.constant 0 : i32
    %c0_i32_1 = arith.constant 0 : i32
    return %c0_i32, %c0_i32_0 : i32, i32
  }
  func.func @transform_4(%arg0: i32) -> (i32, i32) {
    %c0_i32 = arith.constant 0 : i32
    %c0_i32_0 = arith.constant 0 : i32
    %c0_i32_1 = arith.constant 0 : i32
    return %c0_i32, %c0_i32_0 : i32, i32
  }
  func.func @transform_5(%arg0: i32) -> (i32, i32) {
    %c0_i32 = arith.constant 0 : i32
    %c0_i32_0 = arith.constant 0 : i32
    %c0_i32_1 = arith.constant 0 : i32
    return %c0_i32, %c0_i32_0 : i32, i32
  }
}

</mosaic_0001>

<bundles_post_ra>
// kernel: classical_cnn_forward.3
= control target key start
LH: loop header
LB: loop body
LE: loop exit
PB: predicated region body
PF: predicated region fallthrough
CT: control target
= control target key end

     0   :  { %s1623_s12 = smov 0   ;;  %s1837_s0 = inlined_call_operand.vmem [shape: bf16[2,4,196,9], index: 0, kind: input, shape index: {}]   ;;  %s1838_s1 = inlined_call_operand.vmem [shape: bf16[9,32], index: 1, kind: input, shape index: {}]   ;;  %s1839_s2 = inlined_call_operand.vmem [shape: f32[1,32], index: 2, kind: input, shape index: {}]   ;;  %s1840_s3 = inlined_call_operand.vmem [shape: f32[2,196,32], index: 3, kind: output, shape index: {}]  }
   0x1 LB: > { %s1201_s13 = sadd.s32 4294967295, %s1600_s12   ;;  %p1205_p0 = scmp.ge.s32.totalorder %s1600_s12, 1  ;;  %s1600_s12 = sphi %s1623_s12, %s13_s12  }
   0x2   : > { %p137_p1 = scmp.lt.s32.totalorder %s1600_s12, 3 }
   0x4   : > { %p138_p2 = pnand %p1205_p0, %p137_p1 }
   0x5   : > { %p161_p3 = scmp.lt.s32.totalorder (!%p138_p2), %s1201_s13, 1 }
   0x6   : > { %141 = sbr.rel (%p138_p2) target bundleno = 354 (0x162), region = 32 }
   0xb   : > { %v1258_v0 = vld [vmem:[%s1838_s1] sm:$0xf]  ;;  %v1533_v1 = vld [vmem:[%s1838_s1] sm:$0x10]  ;;  %vm307_vm0 = vcmask 1043456   ;;  %vm308_vm1 = vcmask 1044480  }
   0xc   : > { %v1259_v2 = vor.u32 %v1533_v1, %v1258_v0  ;;  %v1602_v3 = vmov 65535   ;;  %s1842_s13 = smov (!%p161_p3, %s1201_s13), 1  ;;  %vm267_vm2 = vcmask 72704   ;;  %v1720_v49 = vld [vmem:[%s1839_s2] ss:$0 sm:$0xff]  ;;  %vm1119_vm3 = vcmask 261120  }
   0xd   : > { %v309_v4 = vsel %vm307_vm0, 4294967295, %v1602_v3  ;;  %s1582_s18 = smul.u32 400, %s1842_s13  ;;  %vm1144_vm4 = vcmask 257024  }
   0xe   : > { %v310_v5 = vsel %vm308_vm1, %v309_v4, 0  ;;  %s1583_s24 = smul.u32 200, %s1842_s13 }
   0xf   : > { %v312_v6 = vand.u32 %v1259_v2, %v310_v5  ;;  %s1643_s21 = scalar_lea.vmem %s1837_s0, %s1582_s18 }
  0x10   : > { %v1534_v7 = vld [vmem:[%s1643_s21] sm:$0xff]  ;;  %v1558_v9 = vld [vmem:[%s1643_s21 + $0xc8] sm:$0xff]  ;;  %v1559_v13 = vld [vmem:[%s1643_s21 + $0xd0] sm:$0xff]  ;;  %s1727_s27 = scalar_lea.vmem %s1840_s3, %s1583_s24 }
  0x11   : > { %321 = vmatpush.bf16.msra.mxu0 %v312_v6  ;;  %522 = vmatpush.bf16.msra.mxu1 %v312_v6  ;;  %v1546_v8 = vld [vmem:[%s1643_s21 + $0x64] sm:$0xff]  ;;  %v1570_v10 = vld [vmem:[%s1643_s21 + $0x12c] sm:$0xff]  ;;  %v1571_v14 = vld [vmem:[%s1643_s21 + $0x134] sm:$0xff] }
  0x12   : > { %748 = vmatpush.bf16.msra.mxu2 %v312_v6  ;;  %974 = vmatpush.bf16.msra.mxu3 %v312_v6  ;;  %v1535_v11 = vld [vmem:[%s1643_s21 + $0x8] sm:$0xff]  ;;  %v1536_v15 = vld [vmem:[%s1643_s21 + $0x10] sm:$0xff]  ;;  %v1560_v17 = vld [vmem:[%s1643_s21 + $0xd8] sm:$0xff] }
  0x13   : > { %v1547_v12 = vld [vmem:[%s1643_s21 + $0x6c] sm:$0xff]  ;;  %v1548_v16 = vld [vmem:[%s1643_s21 + $0x74] sm:$0xff]  ;;  %v1572_v18 = vld [vmem:[%s1643_s21 + $0x13c] sm:$0xff] }
  0x14   : > { %1260 = vmatmul.msk.bf16.vlgmr.msra.gmra.mxu0 %vm267_vm2, %v1534_v7  ;;  %1346 = vmatmul.msk.bf16.vlgmr.msra.gmra.mxu1 %vm267_vm2, %v1546_v8  ;;  %v1537_v19 = vld [vmem:[%s1643_s21 + $0x18] sm:$0xff]  ;;  %v1561_v21 = vld [vmem:[%s1643_s21 + $0xe0] sm:$0xff]  ;;  %v1562_v25 = vld [vmem:[%s1643_s21 + $0xe8] sm:$0xff] }
  0x15   : > { %1432 = vmatmul.msk.bf16.vlgmr.msra.gmra.mxu2 %vm267_vm2, %v1558_v9  ;;  %1518 = vmatmul.msk.bf16.vlgmr.msra.gmra.mxu3 %vm267_vm2, %v1570_v10  ;;  %v1549_v20 = vld [vmem:[%s1643_s21 + $0x7c] sm:$0xff]  ;;  %v1573_v22 = vld [vmem:[%s1643_s21 + $0x144] sm:$0xff]  ;;  %v1574_v26 = vld [vmem:[%s1643_s21 + $0x14c] sm:$0xff] }
  0x16   : > { %v1538_v23 = vld [vmem:[%s1643_s21 + $0x20] sm:$0xff]  ;;  %v1539_v27 = vld [vmem:[%s1643_s21 + $0x28] sm:$0xff]  ;;  %v1563_v29 = vld [vmem:[%s1643_s21 + $0xf0] sm:$0xff] }
  0x17   : > { %v1550_v24 = vld [vmem:[%s1643_s21 + $0x84] sm:$0xff]  ;;  %v1551_v28 = vld [vmem:[%s1643_s21 + $0x8c] sm:$0xff]  ;;  %v1575_v30 = vld [vmem:[%s1643_s21 + $0x154] sm:$0xff] }
  0x18   : > { %v1540_v31 = vld [vmem:[%s1643_s21 + $0x30] sm:$0xff]  ;;  %v1564_v33 = vld [vmem:[%s1643_s21 + $0xf8] sm:$0xff]  ;;  %v1565_v37 = vld [vmem:[%s1643_s21 + $0x100] sm:$0xff] }
  0x19   : > { %v1552_v32 = vld [vmem:[%s1643_s21 + $0x94] sm:$0xff]  ;;  %v1576_v34 = vld [vmem:[%s1643_s21 + $0x15c] sm:$0xff]  ;;  %v1577_v38 = vld [vmem:[%s1643_s21 + $0x164] sm:$0xff] }
  0x1a   : > { %v1541_v35 = vld [vmem:[%s1643_s21 + $0x38] sm:$0xff]  ;;  %v1542_v39 = vld [vmem:[%s1643_s21 + $0x40] sm:$0xff]  ;;  %v1566_v43 = vld [vmem:[%s1643_s21 + $0x108] sm:$0xff] }
  0x1b   : > { %v1553_v36 = vld [vmem:[%s1643_s21 + $0x9c] sm:$0xff]  ;;  %v1554_v40 = vld [vmem:[%s1643_s21 + $0xa4] sm:$0xff]  ;;  %v1578_v44 = vld [vmem:[%s1643_s21 + $0x16c] sm:$0xff] }
  0x1c   : > { %v1543_v58 = vld [vmem:[%s1643_s21 + $0x48] sm:$0xff]  ;;  %v1567_v63 = vld [vmem:[%s1643_s21 + $0x110] sm:$0xff] }
  0x1d   : > { %v1555_v59 = vld [vmem:[%s1643_s21 + $0xac] sm:$0xff]  ;;  %v1579_v0 = vld [vmem:[%s1643_s21 + $0x174] sm:$0xff] }
  0x24   : > { %1261 = vmatmul.msk.bf16.gmra.mxu0 %vm267_vm2, %v1535_v11  ;;  %1347 = vmatmul.msk.bf16.gmra.mxu1 %vm267_vm2, %v1547_v12 }
  0x25   : > { %1433 = vmatmul.msk.bf16.gmra.mxu2 %vm267_vm2, %v1559_v13  ;;  %1519 = vmatmul.msk.bf16.gmra.mxu3 %vm267_vm2, %v1571_v14 }
  0x34   : > { %1262 = vmatmul.msk.bf16.gmra.mxu0 %vm267_vm2, %v1536_v15  ;;  %1348 = vmatmul.msk.bf16.gmra.mxu1 %vm267_vm2, %v1548_v16  ;;  %v1544_v16 = vld [vmem:[%s1643_s21 + $0x50] sm:$0xff] }
  0x35   : > { %1434 = vmatmul.msk.bf16.gmra.mxu2 %vm267_vm2, %v1560_v17  ;;  %1520 = vmatmul.msk.bf16.gmra.mxu3 %vm267_vm2, %v1572_v18  ;;  %v1556_v17 = vld [vmem:[%s1643_s21 + $0xb4] sm:$0xff] }
  0x44   : > { %1263 = vmatmul.msk.bf16.gmra.mxu0 %vm267_vm2, %v1537_v19  ;;  %1349 = vmatmul.msk.bf16.gmra.mxu1 %vm267_vm2, %v1549_v20 }
  0x45   : > { %1435 = vmatmul.msk.bf16.gmra.mxu2 %vm267_vm2, %v1561_v21  ;;  %1521 = vmatmul.msk.bf16.gmra.mxu3 %vm267_vm2, %v1573_v22  ;;  %v1568_v21 = vld [vmem:[%s1643_s21 + $0x118] sm:$0xff] }
  0x46   : > { %v1580_v22 = vld [vmem:[%s1643_s21 + $0x17c] sm:$0xff] }
  0x54   : > { %1264 = vmatmul.msk.bf16.gmra.mxu0 %vm267_vm2, %v1538_v23  ;;  %1350 = vmatmul.msk.bf16.gmra.mxu1 %vm267_vm2, %v1550_v24 }
  0x55   : > { %1436 = vmatmul.msk.bf16.gmra.mxu2 %vm267_vm2, %v1562_v25  ;;  %1522 = vmatmul.msk.bf16.gmra.mxu3 %vm267_vm2, %v1574_v26 }
  0x64   : > { %1265 = vmatmul.msk.bf16.gmra.mxu0 %vm267_vm2, %v1539_v27  ;;  %1351 = vmatmul.msk.bf16.gmra.mxu1 %vm267_vm2, %v1551_v28 }
  0x65   : > { %1437 = vmatmul.msk.bf16.gmra.mxu2 %vm267_vm2, %v1563_v29  ;;  %1523 = vmatmul.msk.bf16.gmra.mxu3 %vm267_vm2, %v1575_v30 }
  0x74   : > { %1266 = vmatmul.msk.bf16.gmra.mxu0 %vm267_vm2, %v1540_v31  ;;  %1352 = vmatmul.msk.bf16.gmra.mxu1 %vm267_vm2, %v1552_v32 }
  0x75   : > { %1438 = vmatmul.msk.bf16.gmra.mxu2 %vm267_vm2, %v1564_v33  ;;  %1524 = vmatmul.msk.bf16.gmra.mxu3 %vm267_vm2, %v1576_v34 }
  0x84   : > { %1267 = vmatmul.msk.bf16.gmra.mxu0 %vm267_vm2, %v1541_v35  ;;  %1353 = vmatmul.msk.bf16.gmra.mxu1 %vm267_vm2, %v1553_v36 }
  0x85   : > { %1439 = vmatmul.msk.bf16.gmra.mxu2 %vm267_vm2, %v1565_v37  ;;  %1525 = vmatmul.msk.bf16.gmra.mxu3 %vm267_vm2, %v1577_v38  ;;  %v1545_v38 = vld [vmem:[%s1643_s21 + $0x58] sm:$0xff] }
  0x91   : > { %v323_v41 = vpop.f32.mrf.mxu0  ;;  %v524_v42 = vpop.f32.mrf.mxu1 }
  0x92   : > { %v588_v45 = vmax.f32 %v323_v41, %v524_v42 }
  0x94   : > { %1268 = vmatmul.msk.bf16.gmra.mxu0 %vm267_vm2, %v1542_v39  ;;  %1354 = vmatmul.msk.bf16.gmra.mxu1 %vm267_vm2, %v1554_v40  ;;  %v1557_v39 = vld [vmem:[%s1643_s21 + $0xbc] sm:$0xff] }
  0x95   : > { %1440 = vmatmul.msk.bf16.gmra.mxu2 %vm267_vm2, %v1566_v43  ;;  %1526 = vmatmul.msk.bf16.gmra.mxu3 %vm267_vm2, %v1578_v44  ;;  %v1569_v43 = vld [vmem:[%s1643_s21 + $0x120] sm:$0xff] }
  0x96   : > { %v1581_v44 = vld [vmem:[%s1643_s21 + $0x184] sm:$0xff] }
  0x98   : > { %v750_v46 = vpop.f32.mrf.mxu2  ;;  %v976_v47 = vpop.f32.mrf.mxu3 }
  0x99   : > { %v814_v48 = vmax.f32 %v588_v45, %v750_v46  ;;  %v325_v50 = vpop.f32.mrf.mxu0  ;;  %v526_v51 = vpop.f32.mrf.mxu1 }
  0x9a   : > { %v589_v55 = vmax.f32 %v325_v50, %v526_v51 }
  0x9b   : > { %v1040_v52 = vmax.f32 %v814_v48, %v976_v47 }
  0x9d   : > { %v1069_v53 = vadd.f32 %v1720_v49, %v1040_v52 }
  0x9f   : > { %v1094_v54 = vmax.f32 %v1069_v53, 0.0 }
  0xa0   : > { %v752_v56 = vpop.f32.mrf.mxu2  ;;  %v978_v57 = vpop.f32.mrf.mxu3 }
  0xa1   : > { %1120 = vst.msk [vmem:[%s1727_s27] sm:$0xff] %vm1119_vm3, %v1094_v54  ;;  %v815_v60 = vmax.f32 %v589_v55, %v752_v56  ;;  %v328_v61 = vpop.f32.mrf.mxu0  ;;  %v529_v62 = vpop.f32.mrf.mxu1  ;;  %v198_v55 = vld [vmem:[%s1643_s21 + $0x60] sm:$0x3]  ;;  %v1297_v56 = vld [vmem:[%s1643_s21 + $0xc4] sm:$0x3] }
  0xa2   : > { %v590_v3 = vmax.f32 %v328_v61, %v529_v62  ;;  %v462_v61 = vunpack.c.l.b16 %v1297_v56 }
  0xa3   : > { %v1041_v1 = vmax.f32 %v815_v60, %v978_v57  ;;  %v1383_v57 = vld [vmem:[%s1643_s21 + $0x128] sm:$0x3]  ;;  %v248_v60 = vunpack.c.l.b16 %v198_v55 }
  0xa4   : > { %1269 = vmatmul.msk.bf16.gmra.mxu0 %vm267_vm2, %v1543_v58  ;;  %1355 = vmatmul.msk.bf16.gmra.mxu1 %vm267_vm2, %v1555_v59  ;;  %v1469_v58 = vld [vmem:[%s1643_s21 + $0x18c] sm:$0x3] }
  0xa5   : > { %v1070_v2 = vadd.f32 %v1720_v49, %v1041_v1  ;;  %1441 = vmatmul.msk.bf16.gmra.mxu2 %vm267_vm2, %v1567_v63  ;;  %1527 = vmatmul.msk.bf16.gmra.mxu3 %vm267_vm2, %v1579_v0  ;;  %v688_v63 = vunpack.c.l.b16 %v1383_v57  ;;  %v914_v0 = vunpack.c.l.b16 %v1469_v58 }
  0xa7   : > { %v1095_v4 = vmax.f32 %v1070_v2, 0.0 }
  0xa8   : > { %v755_v5 = vpop.f32.mrf.mxu2  ;;  %v981_v6 = vpop.f32.mrf.mxu3 }
  0xa9   : > { %1121 = vst.msk [vmem:[%s1727_s27 + $0x8] sm:$0xff] %vm1119_vm3, %v1095_v4  ;;  %v816_v7 = vmax.f32 %v590_v3, %v755_v5  ;;  %v330_v8 = vpop.f32.mrf.mxu0  ;;  %v531_v9 = vpop.f32.mrf.mxu1  ;;  %v261_v5 = vpack.c.b16 %v248_v60, %v248_v60 }
  0xaa   : > { %v591_v13 = vmax.f32 %v330_v8, %v531_v9 }
  0xab   : > { %v1042_v10 = vmax.f32 %v816_v7, %v981_v6  ;;  %v475_v6 = vpack.c.b16 %v462_v61, %v462_v61 }
  0xad   : > { %v1071_v11 = vadd.f32 %v1720_v49, %v1042_v10  ;;  %v701_v10 = vpack.c.b16 %v688_v63, %v688_v63 }
  0xaf   : > { %v1096_v12 = vmax.f32 %v1071_v11, 0.0  ;;  %v927_v11 = vpack.c.b16 %v914_v0, %v914_v0 }
  0xb0   : > { %v757_v14 = vpop.f32.mrf.mxu2  ;;  %v983_v15 = vpop.f32.mrf.mxu3 }
  0xb1   : > { %1122 = vst.msk [vmem:[%s1727_s27 + $0x10] sm:$0xff] %vm1119_vm3, %v1096_v12  ;;  %v817_v18 = vmax.f32 %v591_v13, %v757_v14  ;;  %v333_v19 = vpop.f32.mrf.mxu0  ;;  %v534_v20 = vpop.f32.mrf.mxu1 }
  0xb2   : > { %v592_v25 = vmax.f32 %v333_v19, %v534_v20 }
  0xb3   : > { %v1043_v23 = vmax.f32 %v817_v18, %v983_v15 }
  0xb4   : > { %1270 = vmatmul.msk.bf16.gmra.mxu0 %vm267_vm2, %v1544_v16  ;;  %1356 = vmatmul.msk.bf16.gmra.mxu1 %vm267_vm2, %v1556_v17 }
  0xb5   : > { %v1072_v24 = vadd.f32 %v1720_v49, %v1043_v23  ;;  %1442 = vmatmul.msk.bf16.gmra.mxu2 %vm267_vm2, %v1568_v21  ;;  %1528 = vmatmul.msk.bf16.gmra.mxu3 %vm267_vm2, %v1580_v22 }
  0xb7   : > { %v1097_v26 = vmax.f32 %v1072_v24, 0.0 }
  0xb8   : > { %v760_v27 = vpop.f32.mrf.mxu2  ;;  %v986_v28 = vpop.f32.mrf.mxu3 }
  0xb9   : > { %1123 = vst.msk [vmem:[%s1727_s27 + $0x18] sm:$0xff] %vm1119_vm3, %v1097_v26  ;;  %v818_v29 = vmax.f32 %v592_v25, %v760_v27  ;;  %v335_v30 = vpop.f32.mrf.mxu0  ;;  %v536_v31 = vpop.f32.mrf.mxu1 }
  0xba   : > { %v593_v35 = vmax.f32 %v335_v30, %v536_v31 }
  0xbb   : > { %v1044_v32 = vmax.f32 %v818_v29, %v986_v28 }
  0xbd   : > { %v1073_v33 = vadd.f32 %v1720_v49, %v1044_v32 }
  0xbf   : > { %v1098_v34 = vmax.f32 %v1073_v33, 0.0 }
  0xc0   : > { %v762_v36 = vpop.f32.mrf.mxu2  ;;  %v988_v37 = vpop.f32.mrf.mxu3 }
  0xc1   : > { %1124 = vst.msk [vmem:[%s1727_s27 + $0x20] sm:$0xff] %vm1119_vm3, %v1098_v34  ;;  %v819_v40 = vmax.f32 %v593_v35, %v762_v36  ;;  %v338_v41 = vpop.f32.mrf.mxu0  ;;  %v539_v42 = vpop.f32.mrf.mxu1 }
  0xc2   : > { %v594_v47 = vmax.f32 %v338_v41, %v539_v42 }
  0xc3   : > { %v1045_v45 = vmax.f32 %v819_v40, %v988_v37 }
  0xc4   : > { %1271 = vmatmul.msk.bf16.gmra.mxu0 %vm267_vm2, %v1545_v38  ;;  %1357 = vmatmul.msk.bf16.gmra.mxu1 %vm267_vm2, %v1557_v39 }
  0xc5   : > { %v1074_v46 = vadd.f32 %v1720_v49, %v1045_v45  ;;  %1443 = vmatmul.msk.bf16.gmra.mxu2 %vm267_vm2, %v1569_v43  ;;  %1529 = vmatmul.msk.bf16.gmra.mxu3 %vm267_vm2, %v1581_v44 }
  0xc7   : > { %v1099_v48 = vmax.f32 %v1074_v46, 0.0 }
  0xc8   : > { %v765_v50 = vpop.f32.mrf.mxu2  ;;  %v991_v51 = vpop.f32.mrf.mxu3 }
  0xc9   : > { %1125 = vst.msk [vmem:[%s1727_s27 + $0x28] sm:$0xff] %vm1119_vm3, %v1099_v48  ;;  %v820_v52 = vmax.f32 %v594_v47, %v765_v50  ;;  %v340_v53 = vpop.f32.mrf.mxu0  ;;  %v541_v54 = vpop.f32.mrf.mxu1 }
  0xca   : > { %v595_v2 = vmax.f32 %v340_v53, %v541_v54 }
  0xcb   : > { %v1046_v59 = vmax.f32 %v820_v52, %v991_v51 }
  0xcd   : > { %v1075_v62 = vadd.f32 %v1720_v49, %v1046_v59 }
  0xcf   : > { %v1100_v1 = vmax.f32 %v1075_v62, 0.0 }
  0xd0   : > { %v767_v3 = vpop.f32.mrf.mxu2  ;;  %v993_v4 = vpop.f32.mrf.mxu3 }
  0xd1   : > { %1126 = vst.msk [vmem:[%s1727_s27 + $0x30] sm:$0xff] %vm1119_vm3, %v1100_v1  ;;  %v821_v7 = vmax.f32 %v595_v2, %v767_v3  ;;  %v343_v8 = vpop.f32.mrf.mxu0  ;;  %v544_v9 = vpop.f32.mrf.mxu1 }
  0xd2   : > { %v596_v14 = vmax.f32 %v343_v8, %v544_v9 }
  0xd3   : > { %v1047_v12 = vmax.f32 %v821_v7, %v993_v4 }
  0xd4   : > { %1272 = vmatmul.msk.bf16.gmra.mxu0 %vm267_vm2, %v261_v5  ;;  %1358 = vmatmul.msk.bf16.gmra.mxu1 %vm267_vm2, %v475_v6 }
  0xd5   : > { %v1076_v13 = vadd.f32 %v1720_v49, %v1047_v12  ;;  %1444 = vmatmul.msk.bf16.gmra.mxu2 %vm267_vm2, %v701_v10  ;;  %1530 = vmatmul.msk.bf16.gmra.mxu3 %vm267_vm2, %v927_v11 }
  0xd7   : > { %v1101_v15 = vmax.f32 %v1076_v13, 0.0 }
  0xd8   : > { %v770_v16 = vpop.f32.mrf.mxu2  ;;  %v996_v17 = vpop.f32.mrf.mxu3 }
  0xd9   : > { %1127 = vst.msk [vmem:[%s1727_s27 + $0x38] sm:$0xff] %vm1119_vm3, %v1101_v15  ;;  %v822_v18 = vmax.f32 %v596_v14, %v770_v16  ;;  %v345_v19 = vpop.f32.mrf.mxu0  ;;  %v546_v20 = vpop.f32.mrf.mxu1 }
  0xda   : > { %v597_v24 = vmax.f32 %v345_v19, %v546_v20 }
  0xdb   : > { %v1048_v21 = vmax.f32 %v822_v18, %v996_v17 }
  0xdd   : > { %v1077_v22 = vadd.f32 %v1720_v49, %v1048_v21 }
  0xdf   : > { %v1102_v23 = vmax.f32 %v1077_v22, 0.0 }
  0xe0   : > { %v772_v25 = vpop.f32.mrf.mxu2  ;;  %v998_v26 = vpop.f32.mrf.mxu3 }
  0xe1   : > { %1128 = vst.msk [vmem:[%s1727_s27 + $0x40] sm:$0xff] %vm1119_vm3, %v1102_v23  ;;  %v823_v27 = vmax.f32 %v597_v24, %v772_v25  ;;  %v348_v28 = vpop.f32.mrf.mxu0  ;;  %v549_v29 = vpop.f32.mrf.mxu1 }
  0xe2   : > { %v598_v32 = vmax.f32 %v348_v28, %v549_v29 }
  0xe3   : > { %v1049_v30 = vmax.f32 %v823_v27, %v998_v26 }
  0xe5   : > { %v1078_v31 = vadd.f32 %v1720_v49, %v1049_v30 }
  0xe7   : > { %v1103_v33 = vmax.f32 %v1078_v31, 0.0 }
  0xe8   : > { %v775_v34 = vpop.f32.mrf.mxu2  ;;  %v1001_v35 = vpop.f32.mrf.mxu3 }
  0xe9   : > { %1129 = vst.msk [vmem:[%s1727_s27 + $0x48] sm:$0xff] %vm1119_vm3, %v1103_v33  ;;  %v824_v36 = vmax.f32 %v598_v32, %v775_v34  ;;  %v350_v37 = vpop.f32.mrf.mxu0  ;;  %v551_v38 = vpop.f32.mrf.mxu1 }
  0xea   : > { %v599_v42 = vmax.f32 %v350_v37, %v551_v38 }
  0xeb   : > { %v1050_v39 = vmax.f32 %v824_v36, %v1001_v35 }
  0xed   : > { %v1079_v40 = vadd.f32 %v1720_v49, %v1050_v39 }
  0xef   : > { %v1104_v41 = vmax.f32 %v1079_v40, 0.0 }
  0xf0   : > { %v777_v43 = vpop.f32.mrf.mxu2  ;;  %v1003_v44 = vpop.f32.mrf.mxu3 }
  0xf1   : > { %1130 = vst.msk [vmem:[%s1727_s27 + $0x50] sm:$0xff] %vm1119_vm3, %v1104_v41  ;;  %v825_v45 = vmax.f32 %v599_v42, %v777_v43  ;;  %v353_v46 = vpop.f32.mrf.mxu0  ;;  %v554_v47 = vpop.f32.mrf.mxu1 }
  0xf2   : > { %v600_v51 = vmax.f32 %v353_v46, %v554_v47 }
  0xf3   : > { %v1051_v48 = vmax.f32 %v825_v45, %v1003_v44 }
  0xf5   : > { %v1080_v50 = vadd.f32 %v1720_v49, %v1051_v48 }
  0xf7   : > { %v1105_v52 = vmax.f32 %v1080_v50, 0.0 }
  0xf8   : > { %v780_v53 = vpop.f32.mrf.mxu2  ;;  %v1006_v54 = vpop.f32.mrf.mxu3 }
  0xf9   : > { %1131 = vst.msk [vmem:[%s1727_s27 + $0x58] sm:$0xff] %vm1119_vm3, %v1105_v52  ;;  %v826_v55 = vmax.f32 %v600_v51, %v780_v53  ;;  %v355_v56 = vpop.f32.mrf.mxu0  ;;  %v556_v57 = vpop.f32.mrf.mxu1 }
  0xfa   : > { %v601_v61 = vmax.f32 %v355_v56, %v556_v57 }
  0xfb   : > { %v1052_v58 = vmax.f32 %v826_v55, %v1006_v54 }
  0xfd   : > { %v1081_v59 = vadd.f32 %v1720_v49, %v1052_v58 }
  0xff   : > { %v1106_v60 = vmax.f32 %v1081_v59, 0.0 }
 0x100   : > { %v782_v62 = vpop.f32.mrf.mxu2  ;;  %v1008_v63 = vpop.f32.mrf.mxu3 }
 0x101   : > { %1132 = vst.msk [vmem:[%s1727_s27 + $0x60] sm:$0xff] %vm1119_vm3, %v1106_v60  ;;  %v827_v0 = vmax.f32 %v601_v61, %v782_v62  ;;  %v358_v1 = vpop.f32.mrf.mxu0  ;;  %v559_v2 = vpop.f32.mrf.mxu1 }
 0x102   : > { %v602_v5 = vmax.f32 %v358_v1, %v559_v2 }
 0x103   : > { %v1053_v3 = vmax.f32 %v827_v0, %v1008_v63 }
 0x105   : > { %v1082_v4 = vadd.f32 %v1720_v49, %v1053_v3 }
 0x107   : > { %v1107_v6 = vmax.f32 %v1082_v4, 0.0 }
 0x108   : > { %v785_v7 = vpop.f32.mrf.mxu2  ;;  %v1011_v8 = vpop.f32.mrf.mxu3 }
 0x109   : > { %1133 = vst.msk [vmem:[%s1727_s27 + $0x68] sm:$0xff] %vm1119_vm3, %v1107_v6  ;;  %v828_v9 = vmax.f32 %v602_v5, %v785_v7  ;;  %v360_v10 = vpop.f32.mrf.mxu0  ;;  %v561_v11 = vpop.f32.mrf.mxu1 }
 0x10a   : > { %v603_v15 = vmax.f32 %v360_v10, %v561_v11 }
 0x10b   : > { %v1054_v12 = vmax.f32 %v828_v9, %v1011_v8 }
 0x10d   : > { %v1083_v13 = vadd.f32 %v1720_v49, %v1054_v12 }
 0x10f   : > { %v1108_v14 = vmax.f32 %v1083_v13, 0.0 }
 0x110   : > { %v787_v16 = vpop.f32.mrf.mxu2  ;;  %v1013_v17 = vpop.f32.mrf.mxu3 }
 0x111   : > { %1134 = vst.msk [vmem:[%s1727_s27 + $0x70] sm:$0xff] %vm1119_vm3, %v1108_v14  ;;  %v829_v18 = vmax.f32 %v603_v15, %v787_v16  ;;  %v363_v19 = vpop.f32.mrf.mxu0  ;;  %v564_v20 = vpop.f32.mrf.mxu1 }
 0x112   : > { %v604_v23 = vmax.f32 %v363_v19, %v564_v20 }
 0x113   : > { %v1055_v21 = vmax.f32 %v829_v18, %v1013_v17 }
 0x115   : > { %v1084_v22 = vadd.f32 %v1720_v49, %v1055_v21 }
 0x117   : > { %v1109_v24 = vmax.f32 %v1084_v22, 0.0 }
 0x118   : > { %v790_v25 = vpop.f32.mrf.mxu2  ;;  %v1016_v26 = vpop.f32.mrf.mxu3 }
 0x119   : > { %1135 = vst.msk [vmem:[%s1727_s27 + $0x78] sm:$0xff] %vm1119_vm3, %v1109_v24  ;;  %v830_v27 = vmax.f32 %v604_v23, %v790_v25  ;;  %v365_v28 = vpop.f32.mrf.mxu0  ;;  %v566_v29 = vpop.f32.mrf.mxu1 }
 0x11a   : > { %v605_v33 = vmax.f32 %v365_v28, %v566_v29 }
 0x11b   : > { %v1056_v30 = vmax.f32 %v830_v27, %v1016_v26 }
 0x11d   : > { %v1085_v31 = vadd.f32 %v1720_v49, %v1056_v30 }
 0x11f   : > { %v1110_v32 = vmax.f32 %v1085_v31, 0.0 }
 0x120   : > { %v792_v34 = vpop.f32.mrf.mxu2  ;;  %v1018_v35 = vpop.f32.mrf.mxu3 }
 0x121   : > { %1136 = vst.msk [vmem:[%s1727_s27 + $0x80] sm:$0xff] %vm1119_vm3, %v1110_v32  ;;  %v831_v36 = vmax.f32 %v605_v33, %v792_v34  ;;  %v368_v37 = vpop.f32.mrf.mxu0  ;;  %v569_v38 = vpop.f32.mrf.mxu1 }
 0x122   : > { %v606_v41 = vmax.f32 %v368_v37, %v569_v38 }
 0x123   : > { %v1057_v39 = vmax.f32 %v831_v36, %v1018_v35 }
 0x125   : > { %v1086_v40 = vadd.f32 %v1720_v49, %v1057_v39 }
 0x127   : > { %v1111_v42 = vmax.f32 %v1086_v40, 0.0 }
 0x128   : > { %v795_v43 = vpop.f32.mrf.mxu2  ;;  %v1021_v44 = vpop.f32.mrf.mxu3 }
 0x129   : > { %1137 = vst.msk [vmem:[%s1727_s27 + $0x88] sm:$0xff] %vm1119_vm3, %v1111_v42  ;;  %v832_v45 = vmax.f32 %v606_v41, %v795_v43  ;;  %v370_v46 = vpop.f32.mrf.mxu0  ;;  %v571_v47 = vpop.f32.mrf.mxu1 }
 0x12a   : > { %v607_v52 = vmax.f32 %v370_v46, %v571_v47 }
 0x12b   : > { %v1058_v48 = vmax.f32 %v832_v45, %v1021_v44 }
 0x12d   : > { %v1087_v50 = vadd.f32 %v1720_v49, %v1058_v48 }
 0x12f   : > { %v1112_v51 = vmax.f32 %v1087_v50, 0.0 }
 0x130   : > { %v797_v53 = vpop.f32.mrf.mxu2  ;;  %v1023_v54 = vpop.f32.mrf.mxu3 }
 0x131   : > { %1138 = vst.msk [vmem:[%s1727_s27 + $0x90] sm:$0xff] %vm1119_vm3, %v1112_v51  ;;  %v833_v55 = vmax.f32 %v607_v52, %v797_v53  ;;  %v373_v56 = vpop.f32.mrf.mxu0  ;;  %v574_v57 = vpop.f32.mrf.mxu1 }
 0x132   : > { %v608_v60 = vmax.f32 %v373_v56, %v574_v57 }
 0x133   : > { %v1059_v58 = vmax.f32 %v833_v55, %v1023_v54 }
 0x135   : > { %v1088_v59 = vadd.f32 %v1720_v49, %v1059_v58 }
 0x137   : > { %v1113_v61 = vmax.f32 %v1088_v59, 0.0 }
 0x138   : > { %v800_v62 = vpop.f32.mrf.mxu2  ;;  %v1026_v63 = vpop.f32.mrf.mxu3 }
 0x139   : > { %1139 = vst.msk [vmem:[%s1727_s27 + $0x98] sm:$0xff] %vm1119_vm3, %v1113_v61  ;;  %v834_v0 = vmax.f32 %v608_v60, %v800_v62  ;;  %v375_v1 = vpop.f32.mrf.mxu0  ;;  %v576_v2 = vpop.f32.mrf.mxu1 }
 0x13a   : > { %v609_v6 = vmax.f32 %v375_v1, %v576_v2 }
 0x13b   : > { %v1060_v3 = vmax.f32 %v834_v0, %v1026_v63 }
 0x13d   : > { %v1089_v4 = vadd.f32 %v1720_v49, %v1060_v3 }
 0x13f   : > { %v1114_v5 = vmax.f32 %v1089_v4, 0.0 }
 0x140   : > { %v802_v7 = vpop.f32.mrf.mxu2  ;;  %v1028_v8 = vpop.f32.mrf.mxu3 }
 0x141   : > { %1140 = vst.msk [vmem:[%s1727_s27 + $0xa0] sm:$0xff] %vm1119_vm3, %v1114_v5  ;;  %v835_v9 = vmax.f32 %v609_v6, %v802_v7  ;;  %v378_v10 = vpop.f32.mrf.mxu0  ;;  %v579_v11 = vpop.f32.mrf.mxu1 }
 0x142   : > { %v610_v14 = vmax.f32 %v378_v10, %v579_v11 }
 0x143   : > { %v1061_v12 = vmax.f32 %v835_v9, %v1028_v8 }
 0x145   : > { %v1090_v13 = vadd.f32 %v1720_v49, %v1061_v12 }
 0x147   : > { %v1115_v15 = vmax.f32 %v1090_v13, 0.0 }
 0x148   : > { %v805_v16 = vpop.f32.mrf.mxu2  ;;  %v1031_v17 = vpop.f32.mrf.mxu3 }
 0x149   : > { %1141 = vst.msk [vmem:[%s1727_s27 + $0xa8] sm:$0xff] %vm1119_vm3, %v1115_v15  ;;  %v836_v18 = vmax.f32 %v610_v14, %v805_v16  ;;  %v380_v19 = vpop.f32.mrf.mxu0  ;;  %v581_v20 = vpop.f32.mrf.mxu1 }
 0x14a   : > { %v611_v24 = vmax.f32 %v380_v19, %v581_v20 }
 0x14b   : > { %v1062_v21 = vmax.f32 %v836_v18, %v1031_v17 }
 0x14d   : > { %v1091_v22 = vadd.f32 %v1720_v49, %v1062_v21 }
 0x14f   : > { %v1116_v23 = vmax.f32 %v1091_v22, 0.0 }
 0x150   : > { %v807_v25 = vpop.f32.mrf.mxu2  ;;  %v1033_v26 = vpop.f32.mrf.mxu3 }
 0x151   : > { %1142 = vst.msk [vmem:[%s1727_s27 + $0xb0] sm:$0xff] %vm1119_vm3, %v1116_v23  ;;  %v837_v27 = vmax.f32 %v611_v24, %v807_v25  ;;  %v383_v28 = vpop.f32.mrf.mxu0  ;;  %v584_v29 = vpop.f32.mrf.mxu1 }
 0x152   : > { %v612_v32 = vmax.f32 %v383_v28, %v584_v29 }
 0x153   : > { %v1063_v30 = vmax.f32 %v837_v27, %v1033_v26 }
 0x155   : > { %v1092_v31 = vadd.f32 %v1720_v49, %v1063_v30 }
 0x157   : > { %v1117_v33 = vmax.f32 %v1092_v31, 0.0 }
 0x158   : > { %v810_v34 = vpop.f32.mrf.mxu2  ;;  %v1036_v35 = vpop.f32.mrf.mxu3 }
 0x159   : > { %1143 = vst.msk [vmem:[%s1727_s27 + $0xb8] sm:$0xff] %vm1119_vm3, %v1117_v33  ;;  %v838_v36 = vmax.f32 %v612_v32, %v810_v34  ;;  %v385_v37 = vpop.f32.mrf.mxu0  ;;  %v586_v38 = vpop.f32.mrf.mxu1 }
 0x15b   : > { %v1064_v39 = vmax.f32 %v838_v36, %v1036_v35 }
 0x15d   : > { %v1093_v40 = vadd.f32 %v1720_v49, %v1064_v39 }
 0x15f   : > { %v1118_v41 = vmax.f32 %v1093_v40, 0.0 }
 0x160   : > { %v812_v42 = vpop.f32.mrf.mxu2  ;;  %v1038_v43 = vpop.f32.mrf.mxu3 }
 0x161   : > { %1145 = vst.msk [vmem:[%s1727_s27 + $0xc0] sm:$0xf] %vm1144_vm4, %v1118_v41 }
 0x162 PF: > { %s13_s12 = sadd.s32 1, %s1600_s12  }
 0x163   : > { %p10_p4 = scmp.ge.s32.totalorder %s13_s12, 4  }
 0x165   :  { %12 = sbr.rel (!%p10_p4) target bundleno = 1 (0x1), region = 65 }

// kernel: classical_cnn_forward.4
= control target key start
LH: loop header
LB: loop body
LE: loop exit
PB: predicated region body
PF: predicated region fallthrough
CT: control target
= control target key end

     0   :  { %s1459_s12 = smov 0   ;;  %s1803_s0 = inlined_call_operand.vmem [shape: bf16[2,4,49,288], index: 0, kind: input, shape index: {}]   ;;  %s1804_s1 = inlined_call_operand.vmem [shape: bf16[288,64], index: 1, kind: input, shape index: {}]   ;;  %s1805_s2 = inlined_call_operand.vmem [shape: f32[1,64], index: 2, kind: input, shape index: {}]   ;;  %s1806_s3 = inlined_call_operand.vmem [shape: f32[2,49,64], index: 3, kind: output, shape index: {}]  }
   0x1 LB: > { %s1083_s13 = sadd.s32 4294967295, %s1437_s12   ;;  %p1087_p0 = scmp.ge.s32.totalorder %s1437_s12, 1  ;;  %s1437_s12 = sphi %s1459_s12, %s13_s12  }
   0x2   : > { %p137_p1 = scmp.lt.s32.totalorder %s1437_s12, 3 }
   0x4   : > { %p138_p2 = pnand %p1087_p0, %p137_p1 }
   0x5   : > { %p161_p3 = scmp.lt.s32.totalorder (!%p138_p2), %s1083_s13, 1 }
   0x6   : > { %141 = sbr.rel (%p138_p2) target bundleno = 363 (0x16b), region = 32 }
   0xb   : > { %v1470_v0 = vld [vmem:[%s1804_s1 + $0x38] sm:$0xff]  ;;  %v1480_v2 = vld [vmem:[%s1804_s1 + $0x88] sm:$0xff]  ;;  %v1487_v3 = vld [vmem:[%s1804_s1 + $0x30] sm:$0xff]  ;;  %s1808_s13 = smov (!%p161_p3, %s1083_s13), 1  ;;  %vm385_vm0 = vcmask 261120   ;;  %vm1019_vm1 = vcmask 523264  }
   0xc   : > { %v1475_v1 = vld [vmem:[%s1804_s1 + $0x78] sm:$0xff]  ;;  %398 = vmatpush.bf16.msra.mxu0 %v1470_v0  ;;  %v1492_v4 = vld [vmem:[%s1804_s1 + $0x70] sm:$0xff]  ;;  %460 = vmatpush.bf16.msra.mxu2 %v1480_v2  ;;  %v1501_v5 = vld [vmem:[%s1804_s1 + $0x80] sm:$0xff]  ;;  %s1420_s26 = smul.u32 336, %s1808_s13  ;;  %vm1026_vm2 = vcmask 516096  }
   0xd   : > { %426 = vmatpush.bf16.msra.mxu1 %v1475_v1  ;;  %564 = vmatpush.bf16.msra.mxu3 %v1470_v0  ;;  %v1514_v6 = vld [vmem:[%s1804_s1 + $0x28] sm:$0xff]  ;;  %v1531_v11 = vld [vmem:[%s1804_s1 + $0x20] sm:$0xff]  ;;  %v1545_v13 = vld [vmem:[%s1804_s1 + $0x18] sm:$0xff]  ;;  %s1421_s4 = smul.u32 56, %s1808_s13 }
   0xe   : > { %s1509_s29 = scalar_lea.vmem %s1803_s0, %s1420_s26  ;;  %v1523_v9 = vld [vmem:[%s1804_s1 + $0x68] sm:$0xff]  ;;  %v1538_v12 = vld [vmem:[%s1804_s1 + $0x60] sm:$0xff]  ;;  %v1552_v14 = vld [vmem:[%s1804_s1 + $0x58] sm:$0xff] }
   0xf   : > { %v1100_v7 = vld [vmem:[%s1509_s29 + $0x8] sm:$0xf]  ;;  %v1386_v8 = vld [vmem:[%s1509_s29 + $0x10] sm:$0xf0]  ;;  %v1112_v17 = vld [vmem:[%s1509_s29 + $0x20] sm:$0xf]  ;;  %s1776_s7 = scalar_lea.vmem %s1806_s3, %s1421_s4 }
  0x10   : > { %399 = vmatpush.bf16.msra.mxu0 %v1487_v3  ;;  %461 = vmatpush.bf16.msra.mxu2 %v1501_v5  ;;  %v1101_v10 = vor.u32 %v1386_v8, %v1100_v7  ;;  %v1559_v15 = vld [vmem:[%s1804_s1 + $0x10] sm:$0xff]  ;;  %v1389_v18 = vld [vmem:[%s1509_s29 + $0x28] sm:$0xf0]  ;;  %v1588_v22 = vld [vmem:[%s1804_s1] sm:$0xff] }
  0x11   : > { %427 = vmatpush.bf16.msra.mxu1 %v1492_v4  ;;  %565 = vmatpush.bf16.msra.mxu3 %v1487_v3  ;;  %v1566_v16 = vld [vmem:[%s1804_s1 + $0x50] sm:$0xff]  ;;  %v1113_v19 = vor.u32 %v1389_v18, %v1112_v17  ;;  %v1575_v20 = vld [vmem:[%s1804_s1 + $0x8] sm:$0xff]  ;;  %v1593_v23 = vld [vmem:[%s1804_s1 + $0x40] sm:$0xff] }
  0x12   : > { %v1582_v21 = vld [vmem:[%s1804_s1 + $0x48] sm:$0xff]  ;;  %v1092_v24 = vld [vmem:[%s1509_s29] sm:$0xf]  ;;  %v1384_v26 = vld [vmem:[%s1509_s29 + $0x4] sm:$0xf] }
  0x13   : > { %1198 = vmatmul.msk.bf16.vlgmr.msra.gmra.mxu2 %vm385_vm0, %v1101_v10  ;;  %v1385_v25 = vld [vmem:[%s1509_s29 + $0x8] sm:$0xf0]  ;;  %v1094_v27 = vld [vmem:[%s1509_s29 + $0xc] sm:$0xf0]  ;;  %v1218_v28 = vld [vmem:[%s1509_s29 + $0x54] sm:$0xf] }
  0x14   : > { %592 = vmatpush.bf16.msrb.mxu2 %v1475_v1  ;;  %400 = vmatpush.bf16.msra.mxu0 %v1514_v6  ;;  %v1394_v29 = vld [vmem:[%s1509_s29 + $0x5c] sm:$0xf0]  ;;  %v1093_v30 = vor.u32 %v1385_v25, %v1092_v24  ;;  %v1097_v31 = vor.u32 %v1384_v26, %v1094_v27  ;;  %v1124_v33 = vld [vmem:[%s1509_s29 + $0x38] sm:$0xf]  ;;  %v1392_v34 = vld [vmem:[%s1509_s29 + $0x40] sm:$0xf0] }
  0x15   : > { %428 = vmatpush.bf16.msra.mxu1 %v1523_v9  ;;  %566 = vmatpush.bf16.msra.mxu3 %v1514_v6  ;;  %v1219_v32 = vor.u32 %v1394_v29, %v1218_v28  ;;  %v1125_v35 = vor.u32 %v1392_v34, %v1124_v33  ;;  %v1104_v36 = vld [vmem:[%s1509_s29 + $0x18] sm:$0xf]  ;;  %v1388_v37 = vld [vmem:[%s1509_s29 + $0x20] sm:$0xf0]  ;;  %v1387_v38 = vld [vmem:[%s1509_s29 + $0x1c] sm:$0xf] }
  0x16   : > { %v1106_v39 = vld [vmem:[%s1509_s29 + $0x24] sm:$0xf0]  ;;  %v1230_v40 = vld [vmem:[%s1509_s29 + $0x6c] sm:$0xf]  ;;  %v1397_v41 = vld [vmem:[%s1509_s29 + $0x74] sm:$0xf0]  ;;  %v1105_v42 = vor.u32 %v1388_v37, %v1104_v36 }
  0x17   : > { %v1109_v43 = vor.u32 %v1387_v38, %v1106_v39  ;;  %v1231_v44 = vor.u32 %v1397_v41, %v1230_v40  ;;  %v221_v45 = vld [vmem:[%s1509_s29 + $0x50] sm:$0x1]  ;;  %v1391_v49 = vld [vmem:[%s1509_s29 + $0x38] sm:$0xf0]  ;;  %v1390_v50 = vld [vmem:[%s1509_s29 + $0x34] sm:$0xf] }
  0x18   : > { %593 = vmatpush.bf16.msrb.mxu2 %v1492_v4  ;;  %401 = vmatpush.bf16.msra.mxu0 %v1531_v11  ;;  %v256_v46 = vunpack.c.l.b16 %v221_v45  ;;  %v1116_v48 = vld [vmem:[%s1509_s29 + $0x30] sm:$0xf]  ;;  %v1118_v51 = vld [vmem:[%s1509_s29 + $0x3c] sm:$0xf0]  ;;  %v1242_v52 = vld [vmem:[%s1509_s29 + $0x84] sm:$0xf] }
  0x19   : > { %429 = vmatpush.bf16.msra.mxu1 %v1538_v12  ;;  %567 = vmatpush.bf16.msra.mxu3 %v1531_v11  ;;  %v1400_v53 = vld [vmem:[%s1509_s29 + $0x8c] sm:$0xf0]  ;;  %v1117_v54 = vor.u32 %v1391_v49, %v1116_v48  ;;  %v1121_v55 = vor.u32 %v1390_v50, %v1118_v51  ;;  %v1393_v57 = vld [vmem:[%s1509_s29 + $0x58] sm:$0xf]  ;;  %v1220_v58 = vld [vmem:[%s1509_s29 + $0x60] sm:$0xf0] }
  0x1a   : > { %v268_v47 = vpack.c.b16 %v256_v46, %v256_v46  ;;  %v1243_v56 = vor.u32 %v1400_v53, %v1242_v52  ;;  %v1223_v59 = vor.u32 %v1393_v57, %v1220_v58  ;;  %v220_v60 = vld [vmem:[%s1509_s29 + $0x48] sm:$0x11]  ;;  %v1214_v61 = vld [vmem:[%s1509_s29 + $0x9c] sm:$0x11]  ;;  %v1403_v10 = vld [vmem:[%s1509_s29 + $0xb0] sm:$0xf0] }
  0x1b   : > { %v254_v62 = vunpack.c.l.b16 %v220_v60  ;;  %v255_v63 = vunpack.c.h.b16 %v220_v60  ;;  %v1226_v7 = vld [vmem:[%s1509_s29 + $0x5c] sm:$0xf]  ;;  %v1395_v8 = vld [vmem:[%s1509_s29 + $0x64] sm:$0xf0]  ;;  %v1244_v17 = vld [vmem:[%s1509_s29 + $0x90] sm:$0xf0]  ;;  %v530_v28 = vunpack.c.h.b16 %v1214_v61 }
  0x1c   : > { %594 = vmatpush.bf16.msrb.mxu2 %v1523_v9  ;;  %402 = vmatpush.bf16.msra.mxu0 %v1545_v13  ;;  %v1286_v24 = vld [vmem:[%s1509_s29 + $0xcc] sm:$0xf0]  ;;  %v1409_v33 = vld [vmem:[%s1509_s29 + $0xe0] sm:$0xf0]  ;;  %v1408_v34 = vld [vmem:[%s1509_s29 + $0xdc] sm:$0xf] }
  0x1d   : > { %430 = vmatpush.bf16.msra.mxu1 %v1552_v14  ;;  %568 = vmatpush.bf16.msra.mxu3 %v1545_v13  ;;  %v542_v29 = vpack.c.b16 %v530_v28, %v530_v28  ;;  %v1280_v39 = vld [vmem:[%s1509_s29 + $0xb0] sm:$0xf]  ;;  %v1404_v40 = vld [vmem:[%s1509_s29 + $0xb8] sm:$0xf0]  ;;  %v1292_v51 = vld [vmem:[%s1509_s29 + $0xc8] sm:$0xf] }
  0x1e   : > { %v1281_v41 = vor.u32 %v1404_v40, %v1280_v39  ;;  %v1407_v52 = vld [vmem:[%s1509_s29 + $0xd0] sm:$0xf0]  ;;  %v1411_v57 = vld [vmem:[%s1509_s29 + $0x100] sm:$0xf]  ;;  %v1328_v58 = vld [vmem:[%s1509_s29 + $0x108] sm:$0xf0] }
  0x1f   : > { %v1413_v60 = vld [vmem:[%s1509_s29 + $0x10c] sm:$0xf0]  ;;  %v1418_v39 = vld [vmem:[%s1509_s29 + $0x134] sm:$0xf0] }
  0x20   : > { %595 = vmatpush.bf16.msrb.mxu2 %v1538_v12  ;;  %403 = vmatpush.bf16.msra.mxu0 %v1559_v15  ;;  %v1417_v40 = vld [vmem:[%s1509_s29 + $0x130] sm:$0xf] }
  0x21   : > { %431 = vmatpush.bf16.msra.mxu1 %v1566_v16  ;;  %569 = vmatpush.bf16.msra.mxu3 %v1559_v15 }
  0x23   : > { %1199 = vmatmul.msk.bf16.gmra.mxu2 %vm385_vm0, %v1113_v19  ;;  %v1238_v19 = vld [vmem:[%s1509_s29 + $0x74] sm:$0xf] }
  0x24   : > { %596 = vmatpush.bf16.msrb.mxu2 %v1552_v14  ;;  %404 = vmatpush.bf16.msra.mxu0 %v1575_v20 }
  0x25   : > { %432 = vmatpush.bf16.msra.mxu1 %v1582_v21  ;;  %570 = vmatpush.bf16.msra.mxu3 %v1575_v20 }
  0x28   : > { %597 = vmatpush.bf16.msrb.mxu2 %v1566_v16  ;;  %405 = vmatpush.bf16.msra.mxu0 %v1588_v22 }
  0x29   : > { %433 = vmatpush.bf16.msra.mxu1 %v1593_v23  ;;  %571 = vmatpush.bf16.msra.mxu3 %v1588_v22 }
  0x2b   : > { %406 = vmatmul.bf16.vlgmr.msra.gmra.mxu0 %v1093_v30  ;;  %v1250_v30 = vld [vmem:[%s1509_s29 + $0x8c] sm:$0xf] }
  0x2c   : > { %626 = vmatpush.bf16.msrb.mxu0 %v1480_v2  ;;  %434 = vmatmul.bf16.vlgmr.msra.gmra.mxu1 %v1097_v31  ;;  %v1401_v31 = vld [vmem:[%s1509_s29 + $0x94] sm:$0xf0] }
  0x2d   : > { %765 = vmatpush.bf16.msrb.mxu3 %v1475_v1  ;;  %737 = vmatpush.bf16.msrb.mxu1 %v1470_v0  ;;  %v1251_v36 = vor.u32 %v1401_v31, %v1250_v30 }
  0x2e   : > { %572 = vmatmul.bf16.vlgmr.msra.gmra.mxu3 %v1219_v32  ;;  %598 = vmatpush.bf16.msrb.mxu2 %v1582_v21  ;;  %v1296_v32 = vld [vmem:[%s1509_s29 + $0xd8] sm:$0xf] }
  0x2f   : > { %v1297_v37 = vor.u32 %v1409_v33, %v1296_v32 }
  0x30   : > { %627 = vmatpush.bf16.msrb.mxu0 %v1501_v5 }
  0x31   : > { %766 = vmatpush.bf16.msrb.mxu3 %v1492_v4  ;;  %738 = vmatpush.bf16.msrb.mxu1 %v1487_v3 }
  0x32   : > { %599 = vmatpush.bf16.msrb.mxu2 %v1593_v23 }
  0x33   : > { %1200 = vmatmul.msk.bf16.gmra.mxu2 %vm385_vm0, %v1125_v35  ;;  %v1298_v35 = vld [vmem:[%s1509_s29 + $0xe4] sm:$0xf0] }
  0x34   : > { %910 = vmatpush.bf16.msra.mxu0 %v1470_v0  ;;  %v529_v0 = vunpack.c.l.b16 %v1214_v61  ;;  %v1301_v38 = vor.u32 %v1408_v34, %v1298_v35 }
  0x35   : > { %767 = vmatpush.bf16.msrb.mxu3 %v1523_v9  ;;  %739 = vmatpush.bf16.msrb.mxu1 %v1514_v6 }
  0x36   : > { %799 = vmatpush.bf16.msra.mxu2 %v1480_v2 }
  0x38   : > { %911 = vmatpush.bf16.msra.mxu0 %v1487_v3  ;;  %v541_v3 = vpack.c.b16 %v529_v0, %v529_v0  ;;  %v1331_v0 = vor.u32 %v1411_v57, %v1328_v58  ;;  %v1323_v58 = vld [vmem:[%s1509_s29 + $0x14c] sm:$0x1] }
  0x39   : > { %768 = vmatpush.bf16.msrb.mxu3 %v1538_v12  ;;  %740 = vmatpush.bf16.msrb.mxu1 %v1531_v11 }
  0x3a   : > { %800 = vmatpush.bf16.msra.mxu2 %v1501_v5 }
  0x3b   : > { %411 = vmatmul.bf16.gmra.mxu0 %v1105_v42  ;;  %v1215_v42 = vld [vmem:[%s1509_s29 + $0xa4] sm:$0x1] }
  0x3c   : > { %912 = vmatpush.bf16.msra.mxu0 %v1514_v6  ;;  %439 = vmatmul.bf16.gmra.mxu1 %v1109_v43  ;;  %v1268_v43 = vld [vmem:[%s1509_s29 + $0xf0] sm:$0x11] }
  0x3d   : > { %769 = vmatpush.bf16.msrb.mxu3 %v1552_v14  ;;  %741 = vmatpush.bf16.msrb.mxu1 %v1545_v13  ;;  %v702_v45 = vunpack.c.l.b16 %v1268_v43  ;;  %v703_v46 = vunpack.c.h.b16 %v1268_v43  ;;  %v1419_v43 = vld [vmem:[%s1509_s29 + $0x13c] sm:$0xf0] }
  0x3e   : > { %577 = vmatmul.bf16.gmra.mxu3 %v1231_v44  ;;  %v531_v44 = vunpack.c.l.b16 %v1215_v42  ;;  %v1358_v42 = vld [vmem:[%s1509_s29 + $0x134] sm:$0xf] }
  0x3f   : > { %v714_v49 = vpack.c.b16 %v702_v45, %v702_v45  ;;  %v715_v50 = vpack.c.b16 %v703_v46, %v703_v46 }
  0x40   : > { %913 = vmatpush.bf16.msra.mxu0 %v1531_v11  ;;  %v1402_v11 = vld [vmem:[%s1509_s29 + $0xac] sm:$0xf]  ;;  %v543_v48 = vpack.c.b16 %v531_v44, %v531_v44 }
  0x41   : > { %770 = vmatpush.bf16.msrb.mxu3 %v1566_v16  ;;  %742 = vmatpush.bf16.msrb.mxu1 %v1559_v15 }
  0x43   : > { %1201 = vmatmul.msk.bf16.gmra.mxu2 %vm385_vm0, %v268_v47 }
  0x44   : > { %914 = vmatpush.bf16.msra.mxu0 %v1545_v13  ;;  %v1227_v13 = vor.u32 %v1395_v8, %v1226_v7 }
  0x45   : > { %771 = vmatpush.bf16.msrb.mxu3 %v1582_v21  ;;  %743 = vmatpush.bf16.msrb.mxu1 %v1575_v20 }
  0x48   : > { %915 = vmatpush.bf16.msra.mxu0 %v1559_v15 }
  0x49   : > { %772 = vmatpush.bf16.msrb.mxu3 %v1593_v23  ;;  %744 = vmatpush.bf16.msrb.mxu1 %v1588_v22 }
  0x4b   : > { %416 = vmatmul.bf16.gmra.mxu0 %v1117_v54  ;;  %v1293_v54 = vor.u32 %v1407_v52, %v1292_v51 }
  0x4c   : > { %916 = vmatpush.bf16.msra.mxu0 %v1575_v20  ;;  %444 = vmatmul.bf16.gmra.mxu1 %v1121_v55  ;;  %v1398_v20 = vld [vmem:[%s1509_s29 + $0x7c] sm:$0xf0]  ;;  %v1326_v55 = vld [vmem:[%s1509_s29 + $0xfc] sm:$0xf] }
  0x4d   : > { %972 = vmatpush.bf16.msra.mxu3 %v1480_v2  ;;  %938 = vmatpush.bf16.msra.mxu1 %v1475_v1  ;;  %v266_v1 = vpack.c.b16 %v254_v62, %v254_v62  ;;  %v267_v2 = vpack.c.b16 %v255_v63, %v255_v63  ;;  %v1239_v25 = vor.u32 %v1398_v20, %v1238_v19  ;;  %v1416_v19 = vld [vmem:[%s1509_s29 + $0x124] sm:$0xf0] }
  0x4e   : > { %582 = vmatmul.bf16.gmra.mxu3 %v1243_v56  ;;  %v1412_v56 = vld [vmem:[%s1509_s29 + $0x104] sm:$0xf0] }
  0x4f   : > { %v1327_v62 = vor.u32 %v1412_v56, %v1326_v55  ;;  %v1322_v56 = vld [vmem:[%s1509_s29 + $0x144] sm:$0x11] }
  0x50   : > { %917 = vmatpush.bf16.msra.mxu0 %v1588_v22  ;;  %v1406_v22 = vld [vmem:[%s1509_s29 + $0xc8] sm:$0xf0] }
  0x51   : > { %973 = vmatpush.bf16.msra.mxu3 %v1501_v5  ;;  %939 = vmatpush.bf16.msra.mxu1 %v1492_v4  ;;  %v1396_v4 = vld [vmem:[%s1509_s29 + $0x70] sm:$0xf]  ;;  %v1232_v5 = vld [vmem:[%s1509_s29 + $0x78] sm:$0xf0] }
  0x52   : > { %v1235_v6 = vor.u32 %v1396_v4, %v1232_v5  ;;  %v1304_v5 = vld [vmem:[%s1509_s29 + $0xe0] sm:$0xf] }
  0x53   : > { %600 = vmatmul.bf16.vlgmr.msrb.gmra.mxu2 %v1223_v59  ;;  %v1334_v59 = vld [vmem:[%s1509_s29 + $0x104] sm:$0xf] }
  0x55   : > { %940 = vmatpush.bf16.msra.mxu1 %v1523_v9  ;;  %v1272_v9 = vld [vmem:[%s1509_s29 + $0xa8] sm:$0xf] }
  0x59   : > { %941 = vmatpush.bf16.msra.mxu1 %v1538_v12  ;;  %v1274_v12 = vld [vmem:[%s1509_s29 + $0xb4] sm:$0xf0] }
  0x5a   : > { %v1277_v15 = vor.u32 %v1402_v11, %v1274_v12 }
  0x5b   : > { %421 = vmatmul.bf16.gmra.mxu0 %v266_v1  ;;  %v1335_v1 = vor.u32 %v1413_v60, %v1334_v59  ;;  %v875_v60 = vunpack.c.l.b16 %v1322_v56 }
  0x5c   : > { %449 = vmatmul.bf16.gmra.mxu1 %v267_v2 }
  0x5d   : > { %942 = vmatpush.bf16.msra.mxu1 %v1552_v14  ;;  %v1273_v14 = vor.u32 %v1403_v10, %v1272_v9 }
  0x5e   : > { %587 = vmatmul.bf16.gmra.mxu3 %v541_v3 }
  0x61   : > { %943 = vmatpush.bf16.msra.mxu1 %v1566_v16  ;;  %v1399_v16 = vld [vmem:[%s1509_s29 + $0x88] sm:$0xf] }
  0x62   : > { %v1247_v18 = vor.u32 %v1399_v16, %v1244_v17  ;;  %v1414_v16 = vld [vmem:[%s1509_s29 + $0x118] sm:$0xf]  ;;  %v1340_v17 = vld [vmem:[%s1509_s29 + $0x120] sm:$0xf0] }
  0x63   : > { %605 = vmatmul.bf16.gmra.mxu2 %v1235_v6  ;;  %v1410_v6 = vld [vmem:[%s1509_s29 + $0xe8] sm:$0xf0] }
  0x64   : > { %v1305_v10 = vor.u32 %v1410_v6, %v1304_v5 }
  0x65   : > { %944 = vmatpush.bf16.msra.mxu1 %v1582_v21  ;;  %v1284_v21 = vld [vmem:[%s1509_s29 + $0xc0] sm:$0xf] }
  0x66   : > { %v1285_v26 = vor.u32 %v1406_v22, %v1284_v21 }
  0x69   : > { %945 = vmatpush.bf16.msra.mxu1 %v1593_v23  ;;  %v1405_v23 = vld [vmem:[%s1509_s29 + $0xc4] sm:$0xf] }
  0x6a   : > { %v1289_v27 = vor.u32 %v1405_v23, %v1286_v24  ;;  %v1343_v24 = vor.u32 %v1414_v16, %v1340_v17 }
  0x6b   : > { %1252 = vmatmul.msk.bf16.vlgmr.msrb.gmra.mxu0 %vm385_vm0, %v1227_v13 }
  0x6c   : > { %745 = vmatmul.bf16.vlgmr.msrb.gmra.mxu1 %v1273_v14  ;;  %v1338_v14 = vld [vmem:[%s1509_s29 + $0x114] sm:$0xf] }
  0x6e   : > { %773 = vmatmul.bf16.vlgmr.msrb.gmra.mxu3 %v1277_v15  ;;  %v1415_v15 = vld [vmem:[%s1509_s29 + $0x11c] sm:$0xf0] }
  0x6f   : > { %v1339_v22 = vor.u32 %v1415_v15, %v1338_v14 }
  0x73   : > { %610 = vmatmul.bf16.gmra.mxu2 %v1247_v18  ;;  %v1346_v18 = vld [vmem:[%s1509_s29 + $0x11c] sm:$0xf] }
  0x7b   : > { %1253 = vmatmul.msk.bf16.gmra.mxu0 %vm385_vm0, %v1239_v25  ;;  %v1347_v25 = vor.u32 %v1416_v19, %v1346_v18 }
  0x7c   : > { %750 = vmatmul.bf16.gmra.mxu1 %v1285_v26 }
  0x7e   : > { %778 = vmatmul.bf16.gmra.mxu3 %v1289_v27  ;;  %v1269_v27 = vld [vmem:[%s1509_s29 + $0xf8] sm:$0x1] }
  0x7f   : > { %v704_v30 = vunpack.c.l.b16 %v1269_v27 }
  0x81   : > { %v716_v34 = vpack.c.b16 %v704_v30, %v704_v30 }
  0x83   : > { %615 = vmatmul.bf16.gmra.mxu2 %v542_v29 }
  0x8b   : > { %1254 = vmatmul.msk.bf16.gmra.mxu0 %vm385_vm0, %v1251_v36 }
  0x8c   : > { %755 = vmatmul.bf16.gmra.mxu1 %v1297_v37 }
  0x8e   : > { %783 = vmatmul.bf16.gmra.mxu3 %v1301_v38  ;;  %v1350_v38 = vld [vmem:[%s1509_s29 + $0x12c] sm:$0xf] }
  0x8f   : > { %v1351_v46 = vor.u32 %v1418_v39, %v1350_v38 }
  0x93   : > { %1306 = vmatmul.msk.bf16.vlgmr.msra.gmra.mxu2 %vm385_vm0, %v1281_v41  ;;  %v1352_v41 = vld [vmem:[%s1509_s29 + $0x138] sm:$0xf0] }
  0x96   : > { %v463_v47 = vpop.f32.mrf.mxu2 }
  0x9b   : > { %1255 = vmatmul.msk.bf16.gmra.mxu0 %vm385_vm0, %v543_v48  ;;  %v1355_v48 = vor.u32 %v1417_v40, %v1352_v41 }
  0x9c   : > { %760 = vmatmul.bf16.gmra.mxu1 %v714_v49  ;;  %v1359_v49 = vor.u32 %v1419_v43, %v1358_v42 }
  0x9e   : > { %788 = vmatmul.bf16.gmra.mxu3 %v715_v50  ;;  %v465_v53 = vpop.f32.mrf.mxu2 }
  0xa3   : > { %1307 = vmatmul.msk.bf16.gmra.mxu2 %vm385_vm0, %v1293_v54 }
  0xa6   : > { %v468_v61 = vpop.f32.mrf.mxu2 }
  0xa8   : > { %v407_v63 = vpop.f32.mrf.mxu0 }
  0xa9   : > { %v435_v2 = vpop.f32.mrf.mxu1 }
  0xaa   : > { %v436_v3 = vadd.f32 %v435_v2, %v407_v63  ;;  %v877_v63 = vunpack.c.l.b16 %v1323_v58  ;;  %v887_v2 = vpack.c.b16 %v875_v60, %v875_v60 }
  0xab   : > { %918 = vmatmul.bf16.vlgmr.msra.gmra.mxu0 %v1327_v62  ;;  %v876_v62 = vunpack.c.h.b16 %v1322_v56 }
  0xac   : > { %v1710_v4 = vadd.f32 %v463_v47, %v436_v3  ;;  %946 = vmatmul.bf16.vlgmr.msra.gmra.mxu1 %v1331_v0 }
  0xad   : > { %v888_v6 = vpack.c.b16 %v876_v62, %v876_v62 }
  0xae   : > { %1360 = vmatmul.msk.bf16.vlgmr.msra.gmra.mxu3 %vm385_vm0, %v1335_v1  ;;  %v470_v7 = vpop.f32.mrf.mxu2 }
  0xb0   : > { %v409_v9 = vpop.f32.mrf.mxu0 }
  0xb1   : > { %v1715_v8 = vpop.f32.mrf.mxu3  ;;  %v437_v11 = vpop.f32.mrf.mxu1 }
  0xb2   : > { %v438_v12 = vadd.f32 %v437_v11, %v409_v9 }
  0xb3   : > { %1308 = vmatmul.msk.bf16.gmra.mxu2 %vm385_vm0, %v1305_v10 }
  0xb4   : > { %v1717_v13 = vadd.f32 %v465_v53, %v438_v12 }
  0xb6   : > { %v473_v20 = vpop.f32.mrf.mxu2 }
  0xb8   : > { %v412_v23 = vpop.f32.mrf.mxu0 }
  0xb9   : > { %v1726_v21 = vpop.f32.mrf.mxu3  ;;  %v440_v26 = vpop.f32.mrf.mxu1 }
  0xba   : > { %v441_v28 = vadd.f32 %v440_v26, %v412_v23 }
  0xbb   : > { %923 = vmatmul.bf16.gmra.mxu0 %v1339_v22 }
  0xbc   : > { %v1729_v29 = vadd.f32 %v468_v61, %v441_v28  ;;  %951 = vmatmul.bf16.gmra.mxu1 %v1343_v24 }
  0xbe   : > { %1361 = vmatmul.msk.bf16.gmra.mxu3 %vm385_vm0, %v1347_v25  ;;  %v475_v31 = vpop.f32.mrf.mxu2 }
  0xc0   : > { %v414_v33 = vpop.f32.mrf.mxu0 }
  0xc1   : > { %v578_v32 = vpop.f32.mrf.mxu3  ;;  %v442_v35 = vpop.f32.mrf.mxu1 }
  0xc2   : > { %v443_v36 = vadd.f32 %v442_v35, %v414_v33 }
  0xc3   : > { %1309 = vmatmul.msk.bf16.gmra.mxu2 %vm385_vm0, %v716_v34 }
  0xc4   : > { %v1732_v37 = vadd.f32 %v470_v7, %v443_v36  ;;  %v889_v7 = vpack.c.b16 %v877_v63, %v877_v63 }
  0xc6   : > { %v478_v44 = vpop.f32.mrf.mxu2 }
  0xc8   : > { %v417_v47 = vpop.f32.mrf.mxu0 }
  0xc9   : > { %v580_v45 = vpop.f32.mrf.mxu3  ;;  %v445_v50 = vpop.f32.mrf.mxu1 }
  0xca   : > { %v446_v51 = vadd.f32 %v445_v50, %v417_v47 }
  0xcb   : > { %928 = vmatmul.bf16.gmra.mxu0 %v1351_v46 }
  0xcc   : > { %v1741_v52 = vadd.f32 %v473_v20, %v446_v51  ;;  %956 = vmatmul.bf16.gmra.mxu1 %v1355_v48 }
  0xce   : > { %1362 = vmatmul.msk.bf16.gmra.mxu3 %vm385_vm0, %v1359_v49  ;;  %v480_v53 = vpop.f32.mrf.mxu2 }
  0xd0   : > { %v419_v55 = vpop.f32.mrf.mxu0 }
  0xd1   : > { %v583_v54 = vpop.f32.mrf.mxu3  ;;  %v447_v57 = vpop.f32.mrf.mxu1 }
  0xd2   : > { %v448_v59 = vadd.f32 %v447_v57, %v419_v55 }
  0xd4   : > { %v1746_v61 = vadd.f32 %v475_v31, %v448_v59 }
  0xd6   : > { %v601_v1 = vpop.f32.mrf.mxu2 }
  0xd7   : > { %v602_v3 = vadd.f32 %v601_v1, %v1715_v8 }
  0xd8   : > { %v422_v5 = vpop.f32.mrf.mxu0 }
  0xd9   : > { %v585_v0 = vpop.f32.mrf.mxu3  ;;  %v450_v9 = vpop.f32.mrf.mxu1 }
  0xda   : > { %v451_v10 = vadd.f32 %v450_v9, %v422_v5 }
  0xdb   : > { %933 = vmatmul.bf16.gmra.mxu0 %v887_v2 }
  0xdc   : > { %v1749_v11 = vadd.f32 %v478_v44, %v451_v10  ;;  %961 = vmatmul.bf16.gmra.mxu1 %v888_v6 }
  0xde   : > { %1363 = vmatmul.msk.bf16.gmra.mxu3 %vm385_vm0, %v889_v7  ;;  %v603_v14 = vpop.f32.mrf.mxu2 }
  0xdf   : > { %v604_v15 = vadd.f32 %v603_v14, %v1726_v21 }
  0xe0   : > { %v424_v16 = vpop.f32.mrf.mxu0 }
  0xe1   : > { %v588_v12 = vpop.f32.mrf.mxu3  ;;  %v452_v17 = vpop.f32.mrf.mxu1 }
  0xe6   : > { %v606_v19 = vpop.f32.mrf.mxu2 }
  0xe7   : > { %v607_v8 = vadd.f32 %v606_v19, %v578_v32 }
  0xe8   : > { %v629_v20 = vpop.f32.mrf.mxu0 }
  0xe9   : > { %v590_v18 = vpop.f32.mrf.mxu3  ;;  %v630_v22 = vadd.f32 %v629_v20, %v602_v3  ;;  %v746_v23 = vpop.f32.mrf.mxu1 }
  0xeb   : > { %v648_v24 = vmax.f32 %v1710_v4, %v630_v22 }
  0xee   : > { %v608_v25 = vpop.f32.mrf.mxu2 }
  0xef   : > { %v609_v27 = vadd.f32 %v608_v25, %v580_v45  ;;  %v1769_v25 = vld [vmem:[%s1805_s2] ss:$0 sm:$0xff] }
  0xf0   : > { %v631_v28 = vpop.f32.mrf.mxu0 }
  0xf1   : > { %v774_v26 = vpop.f32.mrf.mxu3  ;;  %v632_v30 = vadd.f32 %v631_v28, %v604_v15  ;;  %v748_v31 = vpop.f32.mrf.mxu1 }
  0xf2   : > { %v775_v58 = vadd.f32 %v774_v26, %v746_v23 }
  0xf3   : > { %v649_v33 = vmax.f32 %v1717_v13, %v632_v30 }
  0xf6   : > { %v611_v34 = vpop.f32.mrf.mxu2 }
  0xf7   : > { %v612_v35 = vadd.f32 %v611_v34, %v583_v54 }
  0xf8   : > { %v634_v36 = vpop.f32.mrf.mxu0 }
  0xf9   : > { %v776_v21 = vpop.f32.mrf.mxu3  ;;  %v635_v38 = vadd.f32 %v634_v36, %v607_v8  ;;  %v751_v39 = vpop.f32.mrf.mxu1 }
  0xfa   : > { %v777_v2 = vadd.f32 %v776_v21, %v748_v31 }
  0xfb   : > { %v650_v32 = vmax.f32 %v1729_v29, %v635_v38 }
  0xfe   : > { %v613_v40 = vpop.f32.mrf.mxu2 }
  0xff   : > { %v614_v42 = vadd.f32 %v613_v40, %v585_v0 }
 0x100   : > { %v636_v4 = vpop.f32.mrf.mxu0 }
 0x101   : > { %v779_v41 = vpop.f32.mrf.mxu3  ;;  %v637_v43 = vadd.f32 %v636_v4, %v609_v27  ;;  %v753_v44 = vpop.f32.mrf.mxu1 }
 0x103   : > { %v651_v45 = vmax.f32 %v1732_v37, %v637_v43 }
 0x106   : > { %v616_v46 = vpop.f32.mrf.mxu2 }
 0x107   : > { %v617_v48 = vadd.f32 %v616_v46, %v588_v12 }
 0x108   : > { %v639_v13 = vpop.f32.mrf.mxu0 }
 0x109   : > { %v781_v47 = vpop.f32.mrf.mxu3  ;;  %v640_v49 = vadd.f32 %v639_v13, %v612_v35  ;;  %v756_v50 = vpop.f32.mrf.mxu1 }
 0x10a   : > { %v782_v8 = vadd.f32 %v781_v47, %v753_v44 }
 0x10b   : > { %v652_v51 = vmax.f32 %v1741_v52, %v640_v49 }
 0x10e   : > { %v618_v53 = vpop.f32.mrf.mxu2 }
 0x110   : > { %v641_v55 = vpop.f32.mrf.mxu0 }
 0x111   : > { %v784_v54 = vpop.f32.mrf.mxu3  ;;  %v1758_v29 = vadd.f32 %v641_v55, %v614_v42  ;;  %v758_v56 = vpop.f32.mrf.mxu1 }
 0x113   : > { %v653_v57 = vmax.f32 %v1746_v61, %v1758_v29  ;;  %v780_v61 = vadd.f32 %v779_v41, %v751_v39 }
 0x116   : > { %v802_v37 = vpop.f32.mrf.mxu2 }
 0x117   : > { %v803_v60 = vadd.f32 %v802_v37, %v775_v58 }
 0x118   : > { %v644_v62 = vpop.f32.mrf.mxu0 }
 0x119   : > { %v786_v59 = vpop.f32.mrf.mxu3  ;;  %v1762_v63 = vadd.f32 %v644_v62, %v617_v48  ;;  %v761_v0 = vpop.f32.mrf.mxu1  ;;  %v821_v1 = vmax.f32 %v648_v24, %v803_v60 }
 0x11a   : > { %v787_v44 = vadd.f32 %v786_v59, %v758_v56 }
 0x11b   : > { %v654_v52 = vmax.f32 %v1749_v11, %v1762_v63 }
 0x11e   : > { %v804_v5 = vpop.f32.mrf.mxu2 }
 0x11f   : > { %v805_v6 = vadd.f32 %v804_v5, %v777_v2 }
 0x120   : > { %v646_v7 = vpop.f32.mrf.mxu0 }
 0x121   : > { %v789_v3 = vpop.f32.mrf.mxu3  ;;  %v763_v9 = vpop.f32.mrf.mxu1  ;;  %v822_v10 = vmax.f32 %v649_v33, %v805_v6  ;;  %v785_v33 = vadd.f32 %v784_v54, %v756_v50 }
 0x126   : > { %v807_v14 = vpop.f32.mrf.mxu2 }
 0x127   : > { %v808_v15 = vadd.f32 %v807_v14, %v780_v61 }
 0x128   : > { %v919_v16 = vpop.f32.mrf.mxu0 }
 0x129   : > { %v791_v12 = vpop.f32.mrf.mxu3  ;;  %v947_v17 = vpop.f32.mrf.mxu1  ;;  %v823_v18 = vmax.f32 %v650_v32, %v808_v15 }
 0x12a   : > { %v948_v19 = vadd.f32 %v947_v17, %v919_v16 }
 0x12e   : > { %v809_v20 = vpop.f32.mrf.mxu2 }
 0x12f   : > { %v810_v23 = vadd.f32 %v809_v20, %v782_v8 }
 0x130   : > { %v921_v26 = vpop.f32.mrf.mxu0 }
 0x131   : > { %v975_v22 = vpop.f32.mrf.mxu3  ;;  %v949_v27 = vpop.f32.mrf.mxu1  ;;  %v824_v28 = vmax.f32 %v651_v45, %v810_v23 }
 0x132   : > { %v976_v24 = vadd.f32 %v975_v22, %v948_v19  ;;  %v950_v21 = vadd.f32 %v949_v27, %v921_v26 }
 0x134   : > { %v994_v30 = vmax.f32 %v821_v1, %v976_v24 }
 0x136   : > { %v1005_v31 = vadd.f32 %v1769_v25, %v994_v30  ;;  %v812_v35 = vpop.f32.mrf.mxu2 }
 0x137   : > { %v813_v38 = vadd.f32 %v812_v35, %v785_v33 }
 0x138   : > { %v1012_v34 = vmax.f32 %v1005_v31, 0.0  ;;  %v924_v32 = vpop.f32.mrf.mxu0 }
 0x139   : > { %v977_v36 = vpop.f32.mrf.mxu3  ;;  %v952_v40 = vpop.f32.mrf.mxu1  ;;  %v825_v41 = vmax.f32 %v652_v51, %v813_v38  ;;  %v790_v51 = vadd.f32 %v789_v3, %v761_v0 }
 0x13a   : > { %1020 = vst.msk [vmem:[%s1776_s7] sm:$0xff] %vm1019_vm1, %v1012_v34  ;;  %v978_v39 = vadd.f32 %v977_v36, %v950_v21  ;;  %v953_v43 = vadd.f32 %v952_v40, %v924_v32 }
 0x13c   : > { %v995_v42 = vmax.f32 %v822_v10, %v978_v39 }
 0x13e   : > { %v1006_v4 = vadd.f32 %v1769_v25, %v995_v42  ;;  %v814_v46 = vpop.f32.mrf.mxu2 }
 0x13f   : > { %v815_v48 = vadd.f32 %v814_v46, %v787_v44 }
 0x140   : > { %v1013_v45 = vmax.f32 %v1006_v4, 0.0  ;;  %v926_v49 = vpop.f32.mrf.mxu0 }
 0x141   : > { %v980_v47 = vpop.f32.mrf.mxu3  ;;  %v954_v50 = vpop.f32.mrf.mxu1  ;;  %v826_v53 = vmax.f32 %v653_v57, %v815_v48 }
 0x142   : > { %1021 = vst.msk [vmem:[%s1776_s7 + $0x8] sm:$0xff] %vm1019_vm1, %v1013_v45  ;;  %v981_v13 = vadd.f32 %v980_v47, %v953_v43  ;;  %v955_v58 = vadd.f32 %v954_v50, %v926_v49 }
 0x144   : > { %v996_v54 = vmax.f32 %v823_v18, %v981_v13 }
 0x146   : > { %v1007_v55 = vadd.f32 %v1769_v25, %v996_v54  ;;  %v817_v37 = vpop.f32.mrf.mxu2 }
 0x147   : > { %v818_v59 = vadd.f32 %v817_v37, %v790_v51 }
 0x148   : > { %v1014_v29 = vmax.f32 %v1007_v55, 0.0  ;;  %v929_v62 = vpop.f32.mrf.mxu0 }
 0x149   : > { %v982_v56 = vpop.f32.mrf.mxu3  ;;  %v957_v1 = vpop.f32.mrf.mxu1  ;;  %v827_v2 = vmax.f32 %v654_v52, %v818_v59 }
 0x14a   : > { %1022 = vst.msk [vmem:[%s1776_s7 + $0x10] sm:$0xff] %vm1019_vm1, %v1014_v29  ;;  %v983_v60 = vadd.f32 %v982_v56, %v955_v58  ;;  %v958_v0 = vadd.f32 %v957_v1, %v929_v62 }
 0x14c   : > { %v997_v57 = vmax.f32 %v824_v28, %v983_v60 }
 0x14e   : > { %v1008_v5 = vadd.f32 %v1769_v25, %v997_v57  ;;  %v819_v7 = vpop.f32.mrf.mxu2 }
 0x150   : > { %v1015_v3 = vmax.f32 %v1008_v5, 0.0  ;;  %v931_v10 = vpop.f32.mrf.mxu0 }
 0x151   : > { %v985_v6 = vpop.f32.mrf.mxu3  ;;  %v959_v61 = vpop.f32.mrf.mxu1 }
 0x152   : > { %1023 = vst.msk [vmem:[%s1776_s7 + $0x18] sm:$0xff] %vm1019_vm1, %v1015_v3  ;;  %v986_v9 = vadd.f32 %v985_v6, %v958_v0  ;;  %v960_v11 = vadd.f32 %v959_v61, %v931_v10 }
 0x154   : > { %v998_v12 = vmax.f32 %v825_v41, %v986_v9 }
 0x156   : > { %v1009_v14 = vadd.f32 %v1769_v25, %v998_v12 }
 0x158   : > { %v1016_v15 = vmax.f32 %v1009_v14, 0.0  ;;  %v934_v16 = vpop.f32.mrf.mxu0 }
 0x159   : > { %v987_v63 = vpop.f32.mrf.mxu3  ;;  %v962_v17 = vpop.f32.mrf.mxu1 }
 0x15a   : > { %1024 = vst.msk [vmem:[%s1776_s7 + $0x20] sm:$0xff] %vm1019_vm1, %v1016_v15  ;;  %v988_v52 = vadd.f32 %v987_v63, %v960_v11  ;;  %v963_v8 = vadd.f32 %v962_v17, %v934_v16 }
 0x15c   : > { %v999_v18 = vmax.f32 %v826_v53, %v988_v52 }
 0x15e   : > { %v1010_v19 = vadd.f32 %v1769_v25, %v999_v18 }
 0x160   : > { %v1017_v20 = vmax.f32 %v1010_v19, 0.0  ;;  %v936_v24 = vpop.f32.mrf.mxu0 }
 0x161   : > { %v990_v22 = vpop.f32.mrf.mxu3  ;;  %v964_v26 = vpop.f32.mrf.mxu1 }
 0x162   : > { %1025 = vst.msk [vmem:[%s1776_s7 + $0x28] sm:$0xff] %vm1019_vm1, %v1017_v20  ;;  %v991_v23 = vadd.f32 %v990_v22, %v963_v8 }
 0x164   : > { %v1000_v27 = vmax.f32 %v827_v2, %v991_v23 }
 0x166   : > { %v1011_v28 = vadd.f32 %v1769_v25, %v1000_v27 }
 0x168   : > { %v1018_v30 = vmax.f32 %v1011_v28, 0.0 }
 0x169   : > { %v992_v31 = vpop.f32.mrf.mxu3 }
 0x16a   : > { %1027 = vst.msk [vmem:[%s1776_s7 + $0x30] sm:$0x1] %vm1026_vm2, %v1018_v30 }
 0x16b PF: > { %s13_s12 = sadd.s32 1, %s1437_s12  }
 0x16c   : > { %p10_p4 = scmp.ge.s32.totalorder %s13_s12, 4  }
 0x16e   :  { %12 = sbr.rel (!%p10_p4) target bundleno = 1 (0x1), region = 65 }

// kernel: classical_cnn_forward.5
= control target key start
LH: loop header
LB: loop body
LE: loop exit
PB: predicated region body
PF: predicated region fallthrough
CT: control target
= control target key end

     0   :  { %s3814_s0 = inlined_call_operand.vmem [shape: bf16[2,3136], index: 0, kind: input, shape index: {}]   ;;  %s3815_s1 = inlined_call_operand.vmem [shape: bf16[3136,128], index: 1, kind: input, shape index: {}]   ;;  %s3816_s2 = inlined_call_operand.vmem [shape: f32[1,128], index: 2, kind: input, shape index: {}]   ;;  %s3817_s3 = inlined_call_operand.vmem [shape: bf16[128,64], index: 3, kind: input, shape index: {}]   ;;  %s3818_s4 = inlined_call_operand.vmem [shape: f32[1,64], index: 4, kind: input, shape index: {}]   ;;  %s3819_s5 = inlined_call_operand.hbm [shape: f32[2,64], index: 5, kind: output, shape index: {}]  }
   0x1   :  { %v2909_v0 = vld [vmem:[%s3815_s1 + $0x38] sm:$0xff]  ;;  %v2908_v4 = vld [vmem:[%s3815_s1 + $0x30] sm:$0xff]  ;;  %v2907_v8 = vld [vmem:[%s3815_s1 + $0x28] sm:$0xff] }
   0x2   :  { %v2925_v1 = vld [vmem:[%s3815_s1 + $0xb8] sm:$0xff]  ;;  %1658 = vmatpush.bf16.msra.mxu0 %v2909_v0  ;;  %v2924_v5 = vld [vmem:[%s3815_s1 + $0xb0] sm:$0xff]  ;;  %v2923_v9 = vld [vmem:[%s3815_s1 + $0xa8] sm:$0xff] }
   0x3   :  { %v2933_v2 = vld [vmem:[%s3815_s1 + $0xf8] sm:$0xff]  ;;  %1684 = vmatpush.bf16.msra.mxu2 %v2925_v1  ;;  %v2932_v6 = vld [vmem:[%s3815_s1 + $0xf0] sm:$0xff]  ;;  %v2931_v10 = vld [vmem:[%s3815_s1 + $0xe8] sm:$0xff] }
   0x4   :  { %v2917_v3 = vld [vmem:[%s3815_s1 + $0x78] sm:$0xff]  ;;  %1697 = vmatpush.bf16.msra.mxu3 %v2933_v2  ;;  %v2916_v7 = vld [vmem:[%s3815_s1 + $0x70] sm:$0xff]  ;;  %v2915_v11 = vld [vmem:[%s3815_s1 + $0x68] sm:$0xff] }
   0x5   :  { %1671 = vmatpush.bf16.msra.mxu1 %v2917_v3  ;;  %v2906_v12 = vld [vmem:[%s3815_s1 + $0x20] sm:$0xff]  ;;  %v2905_v16 = vld [vmem:[%s3815_s1 + $0x18] sm:$0xff]  ;;  %v2904_v21 = vld [vmem:[%s3815_s1 + $0x10] sm:$0xff] }
   0x6   :  { %1659 = vmatpush.bf16.msra.mxu0 %v2908_v4  ;;  %v2922_v13 = vld [vmem:[%s3815_s1 + $0xa0] sm:$0xff]  ;;  %v2921_v17 = vld [vmem:[%s3815_s1 + $0x98] sm:$0xff]  ;;  %v2920_v22 = vld [vmem:[%s3815_s1 + $0x90] sm:$0xff] }
   0x7   :  { %1685 = vmatpush.bf16.msra.mxu2 %v2924_v5  ;;  %v2930_v14 = vld [vmem:[%s3815_s1 + $0xe0] sm:$0xff]  ;;  %v2929_v18 = vld [vmem:[%s3815_s1 + $0xd8] sm:$0xff]  ;;  %v2928_v23 = vld [vmem:[%s3815_s1 + $0xd0] sm:$0xff] }
   0x8   :  { %1698 = vmatpush.bf16.msra.mxu3 %v2932_v6  ;;  %v2914_v15 = vld [vmem:[%s3815_s1 + $0x60] sm:$0xff]  ;;  %v2913_v19 = vld [vmem:[%s3815_s1 + $0x58] sm:$0xff]  ;;  %v2912_v24 = vld [vmem:[%s3815_s1 + $0x50] sm:$0xff] }
   0x9   :  { %1672 = vmatpush.bf16.msra.mxu1 %v2916_v7  ;;  %v22_v20 = vld [vmem:[%s3814_s0] sm:$0xff] }
   0xa   :  { %1660 = vmatpush.bf16.msra.mxu0 %v2907_v8  ;;  %423 = vst [vmem:[#allocation1] ss:$9 sm:$0xff] %v22_v20 }
   0xb   :  { %1686 = vmatpush.bf16.msra.mxu2 %v2923_v9 }
   0xc   :  { %1699 = vmatpush.bf16.msra.mxu3 %v2931_v10 }
   0xd   :  { %1673 = vmatpush.bf16.msra.mxu1 %v2915_v11 }
   0xe   :  { %1661 = vmatpush.bf16.msra.mxu0 %v2906_v12 }
   0xf   :  { %1687 = vmatpush.bf16.msra.mxu2 %v2922_v13 }
  0x10   :  { %1700 = vmatpush.bf16.msra.mxu3 %v2930_v14 }
  0x11   :  { %1674 = vmatpush.bf16.msra.mxu1 %v2914_v15 }
  0x12   :  { %1662 = vmatpush.bf16.msra.mxu0 %v2905_v16 }
  0x13   :  { %1688 = vmatpush.bf16.msra.mxu2 %v2921_v17 }
  0x14   :  { %1701 = vmatpush.bf16.msra.mxu3 %v2929_v18 }
  0x15   :  { %1675 = vmatpush.bf16.msra.mxu1 %v2913_v19 }
  0x16   :  { %10 = vsyncpa [#allocation3], 0  ;;  %1663 = vmatpush.bf16.msra.mxu0 %v2904_v21  ;;  %v2903_v25 = vld [vmem:[%s3815_s1 + $0x8] sm:$0xff]  ;;  %v2902_v29 = vld [vmem:[%s3815_s1] sm:$0xff]  ;;  %vm1655_vm0 = vcmask 523264   ;;  %s3135_s30 = smov [#allocation2]  }
  0x17   :  { %1689 = vmatpush.bf16.msra.mxu2 %v2920_v22  ;;  %v2919_v26 = vld [vmem:[%s3815_s1 + $0x88] sm:$0xff]  ;;  %v2918_v30 = vld [vmem:[%s3815_s1 + $0x80] sm:$0xff]  ;;  %v2941_v32 = vld [vmem:[%s3815_s1 + $0x138] sm:$0xff]  ;;  %s2074_s6 = sshll.u32 %s3135_s30, 4  ;;  %s2076_s9 = sshll.u32 %s3819_s5, 4  ;;  %vm2067_vm1 = vcmask 517120   ;;  %s2075_s6 = int_to_ptr.vmem [resolvable:$true] %s2074_s6  ;;  %s2077_s9 = int_to_ptr.hbm [resolvable:$true] %s2076_s9 }
  0x18   :  { %1702 = vmatpush.bf16.msra.mxu3 %v2928_v23  ;;  %v2927_v27 = vld [vmem:[%s3815_s1 + $0xc8] sm:$0xff]  ;;  %v2926_v31 = vld [vmem:[%s3815_s1 + $0xc0] sm:$0xff]  ;;  %v2957_v33 = vld [vmem:[%s3815_s1 + $0x1b8] sm:$0xff] }
  0x19   :  { %1676 = vmatpush.bf16.msra.mxu1 %v2912_v24  ;;  %v2911_v28 = vld [vmem:[%s3815_s1 + $0x48] sm:$0xff]  ;;  %v2965_v34 = vld [vmem:[%s3815_s1 + $0x1f8] sm:$0xff]  ;;  %v2910_v35 = vld [vmem:[%s3815_s1 + $0x40] sm:$0xff] }
  0x1a   :  { %1664 = vmatpush.bf16.msra.mxu0 %v2903_v25  ;;  %v2949_v36 = vld [vmem:[%s3815_s1 + $0x178] sm:$0xff]  ;;  %v2940_v38 = vld [vmem:[%s3815_s1 + $0x130] sm:$0xff]  ;;  %v424_v39 = vld [vmem:[#allocation1] sm:$0xff] }
  0x1b   :  { %1690 = vmatpush.bf16.msra.mxu2 %v2919_v26  ;;  %v426_v37 = vld [vmem:[#allocation1 + $0x12] sm:$0xff]  ;;  %v427_v42 = vld [vmem:[#allocation1 + $0x1b] sm:$0xff]  ;;  %v425_v44 = vld [vmem:[#allocation1 + $0x9] sm:$0xff] }
  0x1c   :  { %1703 = vmatpush.bf16.msra.mxu3 %v2927_v27  ;;  %v2956_v40 = vld [vmem:[%s3815_s1 + $0x1b0] sm:$0xff]  ;;  %v2939_v45 = vld [vmem:[%s3815_s1 + $0x128] sm:$0xff]  ;;  %v431_v51 = vld [vmem:[#allocation1 + $0x3f] sm:$0xff] }
  0x1d   :  { %1677 = vmatpush.bf16.msra.mxu1 %v2911_v28  ;;  %v2964_v41 = vld [vmem:[%s3815_s1 + $0x1f0] sm:$0xff]  ;;  %v2955_v46 = vld [vmem:[%s3815_s1 + $0x1a8] sm:$0xff]  ;;  %v2938_v54 = vld [vmem:[%s3815_s1 + $0x120] sm:$0xff] }
  0x1e   :  { %1665 = vmatpush.bf16.msra.mxu0 %v2902_v29  ;;  %v2948_v43 = vld [vmem:[%s3815_s1 + $0x170] sm:$0xff]  ;;  %v2963_v47 = vld [vmem:[%s3815_s1 + $0x1e8] sm:$0xff]  ;;  %v2954_v55 = vld [vmem:[%s3815_s1 + $0x1a0] sm:$0xff] }
  0x1f   :  { %1691 = vmatpush.bf16.msra.mxu2 %v2918_v30  ;;  %v2947_v48 = vld [vmem:[%s3815_s1 + $0x168] sm:$0xff]  ;;  %v430_v49 = vld [vmem:[#allocation1 + $0x36] sm:$0xff]  ;;  %v2962_v56 = vld [vmem:[%s3815_s1 + $0x1e0] sm:$0xff] }
  0x20   :  { %1704 = vmatpush.bf16.msra.mxu3 %v2926_v31  ;;  %v428_v50 = vld [vmem:[#allocation1 + $0x24] sm:$0xff]  ;;  %v3304_v53 = vld [vmem:[#allocation1 + $0x2d] sm:$0xff]  ;;  %v2937_v58 = vld [vmem:[%s3815_s1 + $0x118] sm:$0xff] }
  0x21   :  { %1678 = vmatpush.bf16.msra.mxu1 %v2910_v35  ;;  %1666 = vmatmul.bf16.vlgmr.msra.gmra.mxu0 %v424_v39  ;;  %v23_v52 = vld [vmem:[%s3814_s0 + $0x8] sm:$0xff]  ;;  %v2946_v57 = vld [vmem:[%s3815_s1 + $0x160] sm:$0xff]  ;;  %v2953_v59 = vld [vmem:[%s3815_s1 + $0x198] sm:$0xff] }
  0x22   :  { %1710 = vmatpush.bf16.msrb.mxu0 %v2941_v32  ;;  %1692 = vmatmul.bf16.vlgmr.msra.gmra.mxu2 %v426_v37  ;;  %433 = vst [vmem:[#allocation1] ss:$9 sm:$0xff] %v23_v52  ;;  %v2961_v60 = vld [vmem:[%s3815_s1 + $0x1d8] sm:$0xff]  ;;  %v2936_v62 = vld [vmem:[%s3815_s1 + $0x110] sm:$0xff]  ;;  %v2935_v2 = vld [vmem:[%s3815_s1 + $0x108] sm:$0xff] }
  0x23   :  { %1736 = vmatpush.bf16.msrb.mxu2 %v2957_v33  ;;  %1705 = vmatmul.bf16.vlgmr.msra.gmra.mxu3 %v427_v42  ;;  %v2945_v61 = vld [vmem:[%s3815_s1 + $0x158] sm:$0xff]  ;;  %v2952_v63 = vld [vmem:[%s3815_s1 + $0x190] sm:$0xff]  ;;  %v2951_v3 = vld [vmem:[%s3815_s1 + $0x188] sm:$0xff] }
  0x24   :  { %1749 = vmatpush.bf16.msrb.mxu3 %v2965_v34  ;;  %1679 = vmatmul.bf16.vlgmr.msra.gmra.mxu1 %v425_v44  ;;  %v2960_v0 = vld [vmem:[%s3815_s1 + $0x1d0] sm:$0xff]  ;;  %v2959_v4 = vld [vmem:[%s3815_s1 + $0x1c8] sm:$0xff]  ;;  %v2934_v6 = vld [vmem:[%s3815_s1 + $0x100] sm:$0xff] }
  0x25   :  { %1723 = vmatpush.bf16.msrb.mxu1 %v2949_v36  ;;  %v2944_v1 = vld [vmem:[%s3815_s1 + $0x150] sm:$0xff]  ;;  %v2943_v5 = vld [vmem:[%s3815_s1 + $0x148] sm:$0xff]  ;;  %v2950_v7 = vld [vmem:[%s3815_s1 + $0x180] sm:$0xff] }
  0x26   :  { %1711 = vmatpush.bf16.msrb.mxu0 %v2940_v38  ;;  %v2958_v8 = vld [vmem:[%s3815_s1 + $0x1c0] sm:$0xff]  ;;  %v2973_v9 = vld [vmem:[%s3815_s1 + $0x238] sm:$0xff]  ;;  %v2972_v14 = vld [vmem:[%s3815_s1 + $0x230] sm:$0xff] }
  0x27   :  { %1737 = vmatpush.bf16.msrb.mxu2 %v2956_v40  ;;  %v2989_v10 = vld [vmem:[%s3815_s1 + $0x2b8] sm:$0xff]  ;;  %v2942_v12 = vld [vmem:[%s3815_s1 + $0x140] sm:$0xff]  ;;  %v2988_v15 = vld [vmem:[%s3815_s1 + $0x2b0] sm:$0xff] }
  0x28   :  { %1750 = vmatpush.bf16.msrb.mxu3 %v2964_v41  ;;  %v2997_v11 = vld [vmem:[%s3815_s1 + $0x2f8] sm:$0xff]  ;;  %v2996_v16 = vld [vmem:[%s3815_s1 + $0x2f0] sm:$0xff]  ;;  %v2971_v18 = vld [vmem:[%s3815_s1 + $0x228] sm:$0xff] }
  0x29   :  { %1724 = vmatpush.bf16.msrb.mxu1 %v2948_v43  ;;  %v2981_v13 = vld [vmem:[%s3815_s1 + $0x278] sm:$0xff]  ;;  %v2980_v17 = vld [vmem:[%s3815_s1 + $0x270] sm:$0xff]  ;;  %v2987_v19 = vld [vmem:[%s3815_s1 + $0x2a8] sm:$0xff] }
  0x2a   :  { %1712 = vmatpush.bf16.msrb.mxu0 %v2939_v45  ;;  %v2995_v20 = vld [vmem:[%s3815_s1 + $0x2e8] sm:$0xff]  ;;  %v2970_v22 = vld [vmem:[%s3815_s1 + $0x220] sm:$0xff]  ;;  %v2969_v26 = vld [vmem:[%s3815_s1 + $0x218] sm:$0xff] }
  0x2b   :  { %1738 = vmatpush.bf16.msrb.mxu2 %v2955_v46  ;;  %v2979_v21 = vld [vmem:[%s3815_s1 + $0x268] sm:$0xff]  ;;  %v2986_v23 = vld [vmem:[%s3815_s1 + $0x2a0] sm:$0xff]  ;;  %v2985_v27 = vld [vmem:[%s3815_s1 + $0x298] sm:$0xff] }
  0x2c   :  { %1751 = vmatpush.bf16.msrb.mxu3 %v2963_v47  ;;  %v2994_v24 = vld [vmem:[%s3815_s1 + $0x2e0] sm:$0xff]  ;;  %v2993_v28 = vld [vmem:[%s3815_s1 + $0x2d8] sm:$0xff]  ;;  %v2968_v30 = vld [vmem:[%s3815_s1 + $0x210] sm:$0xff] }
  0x2d   :  { %1725 = vmatpush.bf16.msrb.mxu1 %v2947_v48  ;;  %v2978_v25 = vld [vmem:[%s3815_s1 + $0x260] sm:$0xff]  ;;  %v2977_v29 = vld [vmem:[%s3815_s1 + $0x258] sm:$0xff]  ;;  %v2984_v31 = vld [vmem:[%s3815_s1 + $0x290] sm:$0xff] }
  0x2e   :  { %1713 = vmatpush.bf16.msrb.mxu0 %v2938_v54  ;;  %v2992_v32 = vld [vmem:[%s3815_s1 + $0x2d0] sm:$0xff]  ;;  %v2967_v34 = vld [vmem:[%s3815_s1 + $0x208] sm:$0xff]  ;;  %v2966_v38 = vld [vmem:[%s3815_s1 + $0x200] sm:$0xff] }
  0x2f   :  { %1739 = vmatpush.bf16.msrb.mxu2 %v2954_v55  ;;  %v2976_v33 = vld [vmem:[%s3815_s1 + $0x250] sm:$0xff]  ;;  %v2983_v35 = vld [vmem:[%s3815_s1 + $0x288] sm:$0xff]  ;;  %v2982_v39 = vld [vmem:[%s3815_s1 + $0x280] sm:$0xff] }
  0x30   :  { %1752 = vmatpush.bf16.msrb.mxu3 %v2962_v56  ;;  %v2991_v36 = vld [vmem:[%s3815_s1 + $0x2c8] sm:$0xff]  ;;  %v2990_v40 = vld [vmem:[%s3815_s1 + $0x2c0] sm:$0xff]  ;;  %v3005_v41 = vld [vmem:[%s3815_s1 + $0x338] sm:$0xff] }
  0x31   :  { %1726 = vmatpush.bf16.msrb.mxu1 %v2946_v57  ;;  %v2975_v37 = vld [vmem:[%s3815_s1 + $0x248] sm:$0xff]  ;;  %v3021_v42 = vld [vmem:[%s3815_s1 + $0x3b8] sm:$0xff]  ;;  %v2974_v44 = vld [vmem:[%s3815_s1 + $0x240] sm:$0xff] }
  0x32   :  { %1714 = vmatpush.bf16.msrb.mxu0 %v2937_v58  ;;  %v3029_v43 = vld [vmem:[%s3815_s1 + $0x3f8] sm:$0xff]  ;;  %v434_v45 = vld [vmem:[#allocation1] sm:$0xff]  ;;  %v3004_v48 = vld [vmem:[%s3815_s1 + $0x330] sm:$0xff] }
  0x33   :  { %1740 = vmatpush.bf16.msrb.mxu2 %v2953_v59  ;;  %v3013_v46 = vld [vmem:[%s3815_s1 + $0x378] sm:$0xff]  ;;  %v3028_v52 = vld [vmem:[%s3815_s1 + $0x3f0] sm:$0xff]  ;;  %v3003_v54 = vld [vmem:[%s3815_s1 + $0x328] sm:$0xff] }
  0x34   :  { %1753 = vmatpush.bf16.msrb.mxu3 %v2961_v60  ;;  %v436_v47 = vld [vmem:[#allocation1 + $0x12] sm:$0xff]  ;;  %v3019_v55 = vld [vmem:[%s3815_s1 + $0x3a8] sm:$0xff]  ;;  %v3002_v58 = vld [vmem:[%s3815_s1 + $0x320] sm:$0xff] }
  0x35   :  { %1727 = vmatpush.bf16.msrb.mxu1 %v2945_v61  ;;  %v3027_v56 = vld [vmem:[%s3815_s1 + $0x3e8] sm:$0xff]  ;;  %v3018_v59 = vld [vmem:[%s3815_s1 + $0x3a0] sm:$0xff] }
  0x36   :  { %1715 = vmatpush.bf16.msrb.mxu0 %v2936_v62  ;;  %v3011_v57 = vld [vmem:[%s3815_s1 + $0x368] sm:$0xff]  ;;  %v3026_v60 = vld [vmem:[%s3815_s1 + $0x3e0] sm:$0xff]  ;;  %v3001_v62 = vld [vmem:[%s3815_s1 + $0x318] sm:$0xff] }
  0x37   :  { %1741 = vmatpush.bf16.msrb.mxu2 %v2952_v63  ;;  %v3010_v61 = vld [vmem:[%s3815_s1 + $0x360] sm:$0xff]  ;;  %v3017_v63 = vld [vmem:[%s3815_s1 + $0x398] sm:$0xff] }
  0x38   :  { %1754 = vmatpush.bf16.msrb.mxu3 %v2960_v0  ;;  %v3025_v0 = vld [vmem:[%s3815_s1 + $0x3d8] sm:$0xff] }
  0x39   :  { %1728 = vmatpush.bf16.msrb.mxu1 %v2944_v1  ;;  %v3009_v1 = vld [vmem:[%s3815_s1 + $0x358] sm:$0xff] }
  0x3a   :  { %1716 = vmatpush.bf16.msrb.mxu0 %v2935_v2  ;;  %v3000_v2 = vld [vmem:[%s3815_s1 + $0x310] sm:$0xff] }
  0x3b   :  { %1742 = vmatpush.bf16.msrb.mxu2 %v2951_v3  ;;  %v3016_v3 = vld [vmem:[%s3815_s1 + $0x390] sm:$0xff] }
  0x3c   :  { %1755 = vmatpush.bf16.msrb.mxu3 %v2959_v4  ;;  %v3024_v4 = vld [vmem:[%s3815_s1 + $0x3d0] sm:$0xff] }
  0x3d   :  { %1729 = vmatpush.bf16.msrb.mxu1 %v2943_v5  ;;  %v3008_v5 = vld [vmem:[%s3815_s1 + $0x350] sm:$0xff] }
  0x3e   :  { %1717 = vmatpush.bf16.msrb.mxu0 %v2934_v6  ;;  %v2999_v6 = vld [vmem:[%s3815_s1 + $0x308] sm:$0xff] }
  0x3f   :  { %1743 = vmatpush.bf16.msrb.mxu2 %v2950_v7  ;;  %v3015_v7 = vld [vmem:[%s3815_s1 + $0x388] sm:$0xff] }
  0x40   :  { %1756 = vmatpush.bf16.msrb.mxu3 %v2958_v8  ;;  %v3023_v8 = vld [vmem:[%s3815_s1 + $0x3c8] sm:$0xff] }
  0x41   :  { %1730 = vmatpush.bf16.msrb.mxu1 %v2942_v12  ;;  %1718 = vmatmul.bf16.vlgmr.msrb.gmra.mxu0 %v428_v50  ;;  %v3020_v50 = vld [vmem:[%s3815_s1 + $0x3b0] sm:$0xff]  ;;  %v441_v12 = vld [vmem:[#allocation1 + $0x3f] sm:$0xff] }
  0x42   :  { %1762 = vmatpush.bf16.msra.mxu0 %v2973_v9  ;;  %1744 = vmatmul.bf16.vlgmr.msrb.gmra.mxu2 %v430_v49  ;;  %v437_v49 = vld [vmem:[#allocation1 + $0x1b] sm:$0xff]  ;;  %v438_v9 = vld [vmem:[#allocation1 + $0x24] sm:$0xff] }
  0x43   :  { %1788 = vmatpush.bf16.msra.mxu2 %v2989_v10  ;;  %1757 = vmatmul.bf16.vlgmr.msrb.gmra.mxu3 %v431_v51  ;;  %v435_v51 = vld [vmem:[#allocation1 + $0x9] sm:$0xff]  ;;  %v440_v10 = vld [vmem:[#allocation1 + $0x36] sm:$0xff] }
  0x44   :  { %1801 = vmatpush.bf16.msra.mxu3 %v2997_v11  ;;  %1731 = vmatmul.bf16.vlgmr.msrb.gmra.mxu1 %v3304_v53  ;;  %v3012_v53 = vld [vmem:[%s3815_s1 + $0x370] sm:$0xff] }
  0x45   :  { %1775 = vmatpush.bf16.msra.mxu1 %v2981_v13  ;;  %v439_v11 = vld [vmem:[#allocation1 + $0x2d] sm:$0xff] }
  0x46   :  { %1763 = vmatpush.bf16.msra.mxu0 %v2972_v14  ;;  %v24_v13 = vld [vmem:[%s3814_s0 + $0x10] sm:$0xff]  ;;  %v3007_v14 = vld [vmem:[%s3815_s1 + $0x348] sm:$0xff] }
  0x47   :  { %1789 = vmatpush.bf16.msra.mxu2 %v2988_v15  ;;  %443 = vst [vmem:[#allocation1] ss:$9 sm:$0xff] %v24_v13  ;;  %v2998_v15 = vld [vmem:[%s3815_s1 + $0x300] sm:$0xff] }
  0x48   :  { %1802 = vmatpush.bf16.msra.mxu3 %v2996_v16  ;;  %v3014_v16 = vld [vmem:[%s3815_s1 + $0x380] sm:$0xff] }
  0x49   :  { %1776 = vmatpush.bf16.msra.mxu1 %v2980_v17  ;;  %v3037_v17 = vld [vmem:[%s3815_s1 + $0x438] sm:$0xff] }
  0x4a   :  { %1764 = vmatpush.bf16.msra.mxu0 %v2971_v18  ;;  %v3022_v18 = vld [vmem:[%s3815_s1 + $0x3c0] sm:$0xff] }
  0x4b   :  { %1790 = vmatpush.bf16.msra.mxu2 %v2987_v19  ;;  %v3053_v19 = vld [vmem:[%s3815_s1 + $0x4b8] sm:$0xff] }
  0x4c   :  { %1803 = vmatpush.bf16.msra.mxu3 %v2995_v20  ;;  %v3061_v20 = vld [vmem:[%s3815_s1 + $0x4f8] sm:$0xff] }
  0x4d   :  { %1777 = vmatpush.bf16.msra.mxu1 %v2979_v21  ;;  %v3006_v21 = vld [vmem:[%s3815_s1 + $0x340] sm:$0xff] }
  0x4e   :  { %1765 = vmatpush.bf16.msra.mxu0 %v2970_v22  ;;  %v3045_v22 = vld [vmem:[%s3815_s1 + $0x478] sm:$0xff] }
  0x4f   :  { %1791 = vmatpush.bf16.msra.mxu2 %v2986_v23  ;;  %v3036_v23 = vld [vmem:[%s3815_s1 + $0x430] sm:$0xff] }
  0x50   :  { %1804 = vmatpush.bf16.msra.mxu3 %v2994_v24  ;;  %v3052_v24 = vld [vmem:[%s3815_s1 + $0x4b0] sm:$0xff] }
  0x51   :  { %1778 = vmatpush.bf16.msra.mxu1 %v2978_v25  ;;  %v3060_v25 = vld [vmem:[%s3815_s1 + $0x4f0] sm:$0xff] }
  0x52   :  { %1766 = vmatpush.bf16.msra.mxu0 %v2969_v26  ;;  %v3044_v26 = vld [vmem:[%s3815_s1 + $0x470] sm:$0xff] }
  0x53   :  { %1792 = vmatpush.bf16.msra.mxu2 %v2985_v27  ;;  %v3035_v27 = vld [vmem:[%s3815_s1 + $0x428] sm:$0xff] }
  0x54   :  { %1805 = vmatpush.bf16.msra.mxu3 %v2993_v28  ;;  %v3051_v28 = vld [vmem:[%s3815_s1 + $0x4a8] sm:$0xff] }
  0x55   :  { %1779 = vmatpush.bf16.msra.mxu1 %v2977_v29  ;;  %v3059_v29 = vld [vmem:[%s3815_s1 + $0x4e8] sm:$0xff] }
  0x56   :  { %1767 = vmatpush.bf16.msra.mxu0 %v2968_v30  ;;  %v3043_v30 = vld [vmem:[%s3815_s1 + $0x468] sm:$0xff] }
  0x57   :  { %1793 = vmatpush.bf16.msra.mxu2 %v2984_v31  ;;  %v3034_v31 = vld [vmem:[%s3815_s1 + $0x420] sm:$0xff] }
  0x58   :  { %1806 = vmatpush.bf16.msra.mxu3 %v2992_v32  ;;  %v3050_v32 = vld [vmem:[%s3815_s1 + $0x4a0] sm:$0xff] }
  0x59   :  { %1780 = vmatpush.bf16.msra.mxu1 %v2976_v33  ;;  %v3058_v33 = vld [vmem:[%s3815_s1 + $0x4e0] sm:$0xff] }
  0x5a   :  { %1768 = vmatpush.bf16.msra.mxu0 %v2967_v34  ;;  %v3042_v34 = vld [vmem:[%s3815_s1 + $0x460] sm:$0xff] }
  0x5b   :  { %1794 = vmatpush.bf16.msra.mxu2 %v2983_v35  ;;  %v3033_v35 = vld [vmem:[%s3815_s1 + $0x418] sm:$0xff] }
  0x5c   :  { %1807 = vmatpush.bf16.msra.mxu3 %v2991_v36  ;;  %v3049_v36 = vld [vmem:[%s3815_s1 + $0x498] sm:$0xff] }
  0x5d   :  { %1781 = vmatpush.bf16.msra.mxu1 %v2975_v37  ;;  %v3057_v37 = vld [vmem:[%s3815_s1 + $0x4d8] sm:$0xff] }
  0x5e   :  { %1769 = vmatpush.bf16.msra.mxu0 %v2966_v38  ;;  %v3041_v38 = vld [vmem:[%s3815_s1 + $0x458] sm:$0xff] }
  0x5f   :  { %1795 = vmatpush.bf16.msra.mxu2 %v2982_v39  ;;  %v3032_v39 = vld [vmem:[%s3815_s1 + $0x410] sm:$0xff] }
  0x60   :  { %1808 = vmatpush.bf16.msra.mxu3 %v2990_v40  ;;  %v3048_v40 = vld [vmem:[%s3815_s1 + $0x490] sm:$0xff] }
  0x61   :  { %1782 = vmatpush.bf16.msra.mxu1 %v2974_v44  ;;  %1770 = vmatmul.bf16.vlgmr.msra.gmra.mxu0 %v434_v45  ;;  %v3047_v44 = vld [vmem:[%s3815_s1 + $0x488] sm:$0xff] }
  0x62   :  { %1814 = vmatpush.bf16.msrb.mxu0 %v3005_v41  ;;  %1796 = vmatmul.bf16.vlgmr.msra.gmra.mxu2 %v436_v47  ;;  %v3056_v41 = vld [vmem:[%s3815_s1 + $0x4d0] sm:$0xff]  ;;  %v3055_v45 = vld [vmem:[%s3815_s1 + $0x4c8] sm:$0xff]  ;;  %v3030_v47 = vld [vmem:[%s3815_s1 + $0x400] sm:$0xff] }
  0x63   :  { %1840 = vmatpush.bf16.msrb.mxu2 %v3021_v42  ;;  %1809 = vmatmul.bf16.vlgmr.msra.gmra.mxu3 %v437_v49  ;;  %v3040_v42 = vld [vmem:[%s3815_s1 + $0x450] sm:$0xff]  ;;  %v3054_v49 = vld [vmem:[%s3815_s1 + $0x4c0] sm:$0xff] }
  0x64   :  { %1853 = vmatpush.bf16.msrb.mxu3 %v3029_v43  ;;  %1783 = vmatmul.bf16.vlgmr.msra.gmra.mxu1 %v435_v51  ;;  %v3031_v43 = vld [vmem:[%s3815_s1 + $0x408] sm:$0xff]  ;;  %v3085_v51 = vld [vmem:[%s3815_s1 + $0x5b8] sm:$0xff] }
  0x65   :  { %1827 = vmatpush.bf16.msrb.mxu1 %v3013_v46  ;;  %v3039_v46 = vld [vmem:[%s3815_s1 + $0x448] sm:$0xff] }
  0x66   :  { %1815 = vmatpush.bf16.msrb.mxu0 %v3004_v48  ;;  %v3046_v48 = vld [vmem:[%s3815_s1 + $0x480] sm:$0xff] }
  0x67   :  { %1841 = vmatpush.bf16.msrb.mxu2 %v3020_v50  ;;  %v3069_v50 = vld [vmem:[%s3815_s1 + $0x538] sm:$0xff] }
  0x68   :  { %1854 = vmatpush.bf16.msrb.mxu3 %v3028_v52  ;;  %v3093_v52 = vld [vmem:[%s3815_s1 + $0x5f8] sm:$0xff] }
  0x69   :  { %1828 = vmatpush.bf16.msrb.mxu1 %v3012_v53  ;;  %v3038_v53 = vld [vmem:[%s3815_s1 + $0x440] sm:$0xff] }
  0x6a   :  { %1816 = vmatpush.bf16.msrb.mxu0 %v3003_v54  ;;  %v444_v54 = vld [vmem:[#allocation1] sm:$0xff] }
  0x6b   :  { %1842 = vmatpush.bf16.msrb.mxu2 %v3019_v55  ;;  %v446_v55 = vld [vmem:[#allocation1 + $0x12] sm:$0xff] }
  0x6c   :  { %1855 = vmatpush.bf16.msrb.mxu3 %v3027_v56  ;;  %v3077_v56 = vld [vmem:[%s3815_s1 + $0x578] sm:$0xff] }
  0x6d   :  { %1829 = vmatpush.bf16.msrb.mxu1 %v3011_v57  ;;  %v447_v57 = vld [vmem:[#allocation1 + $0x1b] sm:$0xff] }
  0x6e   :  { %1817 = vmatpush.bf16.msrb.mxu0 %v3002_v58  ;;  %v3068_v58 = vld [vmem:[%s3815_s1 + $0x530] sm:$0xff] }
  0x6f   :  { %1843 = vmatpush.bf16.msrb.mxu2 %v3018_v59  ;;  %v445_v59 = vld [vmem:[#allocation1 + $0x9] sm:$0xff] }
  0x70   :  { %1856 = vmatpush.bf16.msrb.mxu3 %v3026_v60  ;;  %v3084_v60 = vld [vmem:[%s3815_s1 + $0x5b0] sm:$0xff] }
  0x71   :  { %1830 = vmatpush.bf16.msrb.mxu1 %v3010_v61  ;;  %v3092_v61 = vld [vmem:[%s3815_s1 + $0x5f0] sm:$0xff] }
  0x72   :  { %1818 = vmatpush.bf16.msrb.mxu0 %v3001_v62  ;;  %v3076_v62 = vld [vmem:[%s3815_s1 + $0x570] sm:$0xff] }
  0x73   :  { %1844 = vmatpush.bf16.msrb.mxu2 %v3017_v63  ;;  %v3067_v63 = vld [vmem:[%s3815_s1 + $0x528] sm:$0xff] }
  0x74   :  { %1857 = vmatpush.bf16.msrb.mxu3 %v3025_v0  ;;  %v3083_v0 = vld [vmem:[%s3815_s1 + $0x5a8] sm:$0xff] }
  0x75   :  { %1831 = vmatpush.bf16.msrb.mxu1 %v3009_v1  ;;  %v3091_v1 = vld [vmem:[%s3815_s1 + $0x5e8] sm:$0xff] }
  0x76   :  { %1819 = vmatpush.bf16.msrb.mxu0 %v3000_v2  ;;  %v3075_v2 = vld [vmem:[%s3815_s1 + $0x568] sm:$0xff] }
  0x77   :  { %1845 = vmatpush.bf16.msrb.mxu2 %v3016_v3  ;;  %v3107_v3 = vld [vmem:[%s3816_s2] ss:$0 sm:$0xff] }
  0x78   :  { %1858 = vmatpush.bf16.msrb.mxu3 %v3024_v4  ;;  %v3697_v4 = vld [vmem:[#allocation1 + $0x24] sm:$0xff] }
  0x79   :  { %1832 = vmatpush.bf16.msrb.mxu1 %v3008_v5  ;;  %v3699_v5 = vld [vmem:[#allocation1 + $0x36] sm:$0xff] }
  0x7a   :  { %1820 = vmatpush.bf16.msrb.mxu0 %v2999_v6  ;;  %v3701_v6 = vld [vmem:[#allocation1 + $0x3f] sm:$0xff] }
  0x7b   :  { %1846 = vmatpush.bf16.msrb.mxu2 %v3015_v7  ;;  %v3703_v7 = vld [vmem:[#allocation1 + $0x2d] sm:$0xff] }
  0x7c   :  { %1859 = vmatpush.bf16.msrb.mxu3 %v3023_v8  ;;  %v25_v8 = vld [vmem:[%s3814_s0 + $0x18] sm:$0x1] }
  0x7d   :  { %1833 = vmatpush.bf16.msrb.mxu1 %v3007_v14  ;;  %453 = vst [vmem:[#allocation1] ss:$9 sm:$0xff] %v25_v8  ;;  %v3074_v14 = vld [vmem:[%s3815_s1 + $0x560] sm:$0xff] }
  0x7e   :  { %1821 = vmatpush.bf16.msrb.mxu0 %v2998_v15  ;;  %v3065_v15 = vld [vmem:[%s3815_s1 + $0x518] sm:$0xff] }
  0x7f   :  { %1847 = vmatpush.bf16.msrb.mxu2 %v3014_v16 }
  0x80   :  { %1860 = vmatpush.bf16.msrb.mxu3 %v3022_v18  ;;  %v3089_v18 = vld [vmem:[%s3815_s1 + $0x5d8] sm:$0xff] }
  0x81   :  { %1834 = vmatpush.bf16.msrb.mxu1 %v3006_v21  ;;  %1822 = vmatmul.bf16.vlgmr.msrb.gmra.mxu0 %v438_v9  ;;  %v3066_v9 = vld [vmem:[%s3815_s1 + $0x520] sm:$0xff]  ;;  %v3073_v21 = vld [vmem:[%s3815_s1 + $0x558] sm:$0xff] }
  0x82   :  { %1866 = vmatpush.bf16.msra.mxu0 %v3037_v17  ;;  %1848 = vmatmul.bf16.vlgmr.msrb.gmra.mxu2 %v440_v10  ;;  %v3082_v10 = vld [vmem:[%s3815_s1 + $0x5a0] sm:$0xff]  ;;  %v3081_v17 = vld [vmem:[%s3815_s1 + $0x598] sm:$0xff] }
  0x83   :  { %1892 = vmatpush.bf16.msra.mxu2 %v3053_v19  ;;  %1861 = vmatmul.bf16.vlgmr.msrb.gmra.mxu3 %v441_v12 }
  0x84   :  { %1905 = vmatpush.bf16.msra.mxu3 %v3061_v20  ;;  %1835 = vmatmul.bf16.vlgmr.msrb.gmra.mxu1 %v439_v11  ;;  %v3090_v11 = vld [vmem:[%s3815_s1 + $0x5e0] sm:$0xff] }
  0x85   :  { %1879 = vmatpush.bf16.msra.mxu1 %v3045_v22 }
  0x86   :  { %1867 = vmatpush.bf16.msra.mxu0 %v3036_v23  ;;  %v3064_v23 = vld [vmem:[%s3815_s1 + $0x510] sm:$0xff] }
  0x87   :  { %1893 = vmatpush.bf16.msra.mxu2 %v3052_v24 }
  0x88   :  { %1906 = vmatpush.bf16.msra.mxu3 %v3060_v25  ;;  %v3080_v25 = vld [vmem:[%s3815_s1 + $0x590] sm:$0xff] }
  0x89   :  { %1880 = vmatpush.bf16.msra.mxu1 %v3044_v26  ;;  %v3088_v26 = vld [vmem:[%s3815_s1 + $0x5d0] sm:$0xff] }
  0x8a   :  { %1868 = vmatpush.bf16.msra.mxu0 %v3035_v27 }
  0x8b   :  { %1894 = vmatpush.bf16.msra.mxu2 %v3051_v28 }
  0x8c   :  { %1907 = vmatpush.bf16.msra.mxu3 %v3059_v29  ;;  %v3072_v29 = vld [vmem:[%s3815_s1 + $0x550] sm:$0xff] }
  0x8d   :  { %1881 = vmatpush.bf16.msra.mxu1 %v3043_v30  ;;  %v3063_v30 = vld [vmem:[%s3815_s1 + $0x508] sm:$0xff] }
  0x8e   :  { %1869 = vmatpush.bf16.msra.mxu0 %v3034_v31 }
  0x8f   :  { %1895 = vmatpush.bf16.msra.mxu2 %v3050_v32  ;;  %v3079_v32 = vld [vmem:[%s3815_s1 + $0x588] sm:$0xff] }
  0x90   :  { %1908 = vmatpush.bf16.msra.mxu3 %v3058_v33  ;;  %v3087_v33 = vld [vmem:[%s3815_s1 + $0x5c8] sm:$0xff] }
  0x91   :  { %1882 = vmatpush.bf16.msra.mxu1 %v3042_v34 }
  0x92   :  { %1870 = vmatpush.bf16.msra.mxu0 %v3033_v35  ;;  %v3071_v35 = vld [vmem:[%s3815_s1 + $0x548] sm:$0xff] }
  0x93   :  { %1896 = vmatpush.bf16.msra.mxu2 %v3049_v36  ;;  %v3062_v36 = vld [vmem:[%s3815_s1 + $0x500] sm:$0xff] }
  0x94   :  { %1909 = vmatpush.bf16.msra.mxu3 %v3057_v37 }
  0x95   :  { %1883 = vmatpush.bf16.msra.mxu1 %v3041_v38  ;;  %v3078_v38 = vld [vmem:[%s3815_s1 + $0x580] sm:$0xff] }
  0x96   :  { %1871 = vmatpush.bf16.msra.mxu0 %v3032_v39  ;;  %v3086_v39 = vld [vmem:[%s3815_s1 + $0x5c0] sm:$0xff] }
  0x97   :  { %1897 = vmatpush.bf16.msra.mxu2 %v3048_v40  ;;  %v3097_v40 = vld [vmem:[%s3815_s1 + $0x618] sm:$0xff] }
  0x98   :  { %1910 = vmatpush.bf16.msra.mxu3 %v3056_v41  ;;  %v3070_v41 = vld [vmem:[%s3815_s1 + $0x540] sm:$0xff] }
  0x99   :  { %1884 = vmatpush.bf16.msra.mxu1 %v3040_v42  ;;  %v3096_v42 = vld [vmem:[%s3815_s1 + $0x610] sm:$0xff] }
  0x9a   :  { %1872 = vmatpush.bf16.msra.mxu0 %v3031_v43  ;;  %v3095_v43 = vld [vmem:[%s3815_s1 + $0x608] sm:$0xff] }
  0x9b   :  { %1898 = vmatpush.bf16.msra.mxu2 %v3047_v44  ;;  %v3094_v44 = vld [vmem:[%s3815_s1 + $0x600] sm:$0xff] }
  0x9c   :  { %1911 = vmatpush.bf16.msra.mxu3 %v3055_v45 }
  0x9d   :  { %1885 = vmatpush.bf16.msra.mxu1 %v3039_v46 }
  0x9e   :  { %1873 = vmatpush.bf16.msra.mxu0 %v3030_v47  ;;  %v1667_v12 = vpop.f32.mrf.mxu0 }
  0x9f   :  { %1899 = vmatpush.bf16.msra.mxu2 %v3046_v48  ;;  %v1668_v13 = vadd.f32 %v3107_v3, %v1667_v12 }
  0xa0   :  { %1912 = vmatpush.bf16.msra.mxu3 %v3054_v49  ;;  %v454_v49 = vld [vmem:[#allocation1] sm:$0xff] }
  0xa1   :  { %1886 = vmatpush.bf16.msra.mxu1 %v3038_v53  ;;  %1874 = vmatmul.bf16.vlgmr.msra.gmra.mxu0 %v444_v54  ;;  %v1680_v16 = vpop.f32.mrf.mxu1 }
  0xa2   :  { %1918 = vmatpush.bf16.msrb.mxu0 %v3069_v50  ;;  %1900 = vmatmul.bf16.vlgmr.msra.gmra.mxu2 %v446_v55  ;;  %v1681_v19 = vadd.f32 %v1680_v16, %v1668_v13  ;;  %v3104_v13 = vld [vmem:[%s3817_s3 + $0x30] sm:$0xff]  ;;  %v3103_v16 = vld [vmem:[%s3817_s3 + $0x28] sm:$0xff] }
  0xa3   :  { %1944 = vmatpush.bf16.msrb.mxu2 %v3085_v51  ;;  %1913 = vmatmul.bf16.vlgmr.msra.gmra.mxu3 %v447_v57 }
  0xa4   :  { %1957 = vmatpush.bf16.msrb.mxu3 %v3093_v52  ;;  %1887 = vmatmul.bf16.vlgmr.msra.gmra.mxu1 %v445_v59 }
  0xa5   :  { %1931 = vmatpush.bf16.msrb.mxu1 %v3077_v56  ;;  %v1693_v20 = vpop.f32.mrf.mxu2 }
  0xa6   :  { %1919 = vmatpush.bf16.msrb.mxu0 %v3068_v58  ;;  %v1694_v22 = vadd.f32 %v1693_v20, %v1681_v19  ;;  %v1706_v24 = vpop.f32.mrf.mxu3  ;;  %v1669_v28 = vpop.f32.mrf.mxu0  ;;  %v3101_v20 = vld [vmem:[%s3817_s3 + $0x18] sm:$0xff] }
  0xa7   :  { %1945 = vmatpush.bf16.msrb.mxu2 %v3084_v60 }
  0xa8   :  { %1958 = vmatpush.bf16.msrb.mxu3 %v3092_v61  ;;  %v1707_v27 = vadd.f32 %v1706_v24, %v1694_v22  ;;  %v3100_v24 = vld [vmem:[%s3817_s3 + $0x10] sm:$0xff] }
  0xa9   :  { %1932 = vmatpush.bf16.msrb.mxu1 %v3076_v62  ;;  %v1682_v31 = vpop.f32.mrf.mxu1 }
  0xaa   :  { %1920 = vmatpush.bf16.msrb.mxu0 %v3067_v63 }
  0xab   :  { %1946 = vmatpush.bf16.msrb.mxu2 %v3083_v0 }
  0xac   :  { %1959 = vmatpush.bf16.msrb.mxu3 %v3091_v1 }
  0xad   :  { %1933 = vmatpush.bf16.msrb.mxu1 %v3075_v2  ;;  %v1695_v34 = vpop.f32.mrf.mxu2 }
  0xae   :  { %1921 = vmatpush.bf16.msrb.mxu0 %v3066_v9  ;;  %v1708_v37 = vpop.f32.mrf.mxu3 }
  0xaf   :  { %1947 = vmatpush.bf16.msrb.mxu2 %v3082_v10  ;;  %v3105_v10 = vld [vmem:[%s3817_s3 + $0x38] sm:$0xff] }
  0xb0   :  { %1960 = vmatpush.bf16.msrb.mxu3 %v3090_v11 }
  0xb1   :  { %1934 = vmatpush.bf16.msrb.mxu1 %v3074_v14 }
  0xb2   :  { %1922 = vmatpush.bf16.msrb.mxu0 %v3065_v15 }
  0xb3   :  { %1948 = vmatpush.bf16.msrb.mxu2 %v3081_v17 }
  0xb4   :  { %1961 = vmatpush.bf16.msrb.mxu3 %v3089_v18  ;;  %v3102_v18 = vld [vmem:[%s3817_s3 + $0x20] sm:$0xff] }
  0xb5   :  { %1935 = vmatpush.bf16.msrb.mxu1 %v3073_v21 }
  0xb6   :  { %1923 = vmatpush.bf16.msrb.mxu0 %v3064_v23 }
  0xb7   :  { %1949 = vmatpush.bf16.msrb.mxu2 %v3080_v25 }
  0xb8   :  { %1962 = vmatpush.bf16.msrb.mxu3 %v3088_v26 }
  0xb9   :  { %1936 = vmatpush.bf16.msrb.mxu1 %v3072_v29 }
  0xba   :  { %1924 = vmatpush.bf16.msrb.mxu0 %v3063_v30 }
  0xbb   :  { %1950 = vmatpush.bf16.msrb.mxu2 %v3079_v32  ;;  %v3098_v32 = vld [vmem:[%s3817_s3] sm:$0xff] }
  0xbc   :  { %1963 = vmatpush.bf16.msrb.mxu3 %v3087_v33 }
  0xbd   :  { %1937 = vmatpush.bf16.msrb.mxu1 %v3071_v35 }
  0xbe   :  { %1925 = vmatpush.bf16.msrb.mxu0 %v3062_v36  ;;  %v1719_v45 = vpop.f32.mrf.mxu0 }
  0xbf   :  { %1951 = vmatpush.bf16.msrb.mxu2 %v3078_v38  ;;  %v1720_v46 = vadd.f32 %v1719_v45, %v1707_v27  ;;  %v3099_v27 = vld [vmem:[%s3817_s3 + $0x8] sm:$0xff] }
  0xc0   :  { %1964 = vmatpush.bf16.msrb.mxu3 %v3086_v39 }
  0xc1   :  { %1938 = vmatpush.bf16.msrb.mxu1 %v3070_v41  ;;  %1926 = vmatmul.bf16.vlgmr.msrb.gmra.mxu0 %v3697_v4  ;;  %v1732_v47 = vpop.f32.mrf.mxu1 }
  0xc2   :  { %1974 = vmatpush.bf16.msra.mxu0 %v3097_v40  ;;  %1952 = vmatmul.bf16.vlgmr.msrb.gmra.mxu2 %v3699_v5  ;;  %v1733_v48 = vadd.f32 %v1732_v47, %v1720_v46 }
  0xc3   :  { %1965 = vmatmul.bf16.vlgmr.msrb.gmra.mxu3 %v3701_v6 }
  0xc4   :  { %1939 = vmatmul.bf16.vlgmr.msrb.gmra.mxu1 %v3703_v7 }
  0xc5   :  { %v1745_v50 = vpop.f32.mrf.mxu2  ;;  %2053 = vmatpush.bf16.msra.mxu1 %v3105_v10 }
  0xc6   :  { %1975 = vmatpush.bf16.msra.mxu0 %v3096_v42  ;;  %v1746_v51 = vadd.f32 %v1745_v50, %v1733_v48  ;;  %v1758_v52 = vpop.f32.mrf.mxu3  ;;  %v1721_v54 = vpop.f32.mrf.mxu0 }
  0xc8   :  { %v1759_v53 = vadd.f32 %v1758_v52, %v1746_v51 }
  0xc9   :  { %v1734_v55 = vpop.f32.mrf.mxu1  ;;  %2054 = vmatpush.bf16.msra.mxu1 %v3104_v13 }
  0xca   :  { %1976 = vmatpush.bf16.msra.mxu0 %v3095_v43  ;;  %v3108_v55 = vld [vmem:[%s3818_s4] ss:$0 sm:$0xff] }
  0xcd   :  { %v1747_v56 = vpop.f32.mrf.mxu2  ;;  %2055 = vmatpush.bf16.msra.mxu1 %v3103_v16 }
  0xce   :  { %1977 = vmatpush.bf16.msra.mxu0 %v3094_v44  ;;  %v1760_v57 = vpop.f32.mrf.mxu3 }
  0xd1   :  { %2869 = vmatmul.msk.bf16.vlgmr.msra.gmra.mxu0 %vm1655_vm0, %v454_v49  ;;  %2056 = vmatpush.bf16.msra.mxu1 %v3102_v18 }
  0xd5   :  { %2057 = vmatpush.bf16.msra.mxu1 %v3101_v20 }
  0xd9   :  { %2058 = vmatpush.bf16.msra.mxu1 %v3100_v24 }
  0xdd   :  { %2059 = vmatpush.bf16.msra.mxu1 %v3099_v27 }
  0xde   :  { %v1771_v58 = vpop.f32.mrf.mxu0 }
  0xdf   :  { %v1772_v59 = vadd.f32 %v1771_v58, %v1759_v53 }
  0xe1   :  { %v1784_v60 = vpop.f32.mrf.mxu1  ;;  %2060 = vmatpush.bf16.msra.mxu1 %v3098_v32 }
  0xe2   :  { %v1785_v61 = vadd.f32 %v1784_v60, %v1772_v59 }
  0xe5   :  { %v1797_v62 = vpop.f32.mrf.mxu2 }
  0xe6   :  { %v1798_v63 = vadd.f32 %v1797_v62, %v1785_v61  ;;  %v1810_v0 = vpop.f32.mrf.mxu3  ;;  %v1773_v1 = vpop.f32.mrf.mxu0 }
  0xe8   :  { %v1811_v2 = vadd.f32 %v1810_v0, %v1798_v63 }
  0xe9   :  { %v1786_v3 = vpop.f32.mrf.mxu1 }
  0xed   :  { %v1799_v4 = vpop.f32.mrf.mxu2 }
  0xee   :  { %v1812_v5 = vpop.f32.mrf.mxu3 }
  0xfe   :  { %v1823_v6 = vpop.f32.mrf.mxu0 }
  0xff   :  { %v1824_v25 = vadd.f32 %v1823_v6, %v1811_v2 }
 0x101   :  { %v1836_v7 = vpop.f32.mrf.mxu1 }
 0x102   :  { %v1837_v28 = vadd.f32 %v1836_v7, %v1824_v25 }
 0x105   :  { %v1849_v8 = vpop.f32.mrf.mxu2 }
 0x106   :  { %v1862_v9 = vpop.f32.mrf.mxu3  ;;  %v1825_v11 = vpop.f32.mrf.mxu0  ;;  %v1850_v31 = vadd.f32 %v1849_v8, %v1837_v28 }
 0x108   :  { %v1863_v33 = vadd.f32 %v1862_v9, %v1850_v31 }
 0x109   :  { %v1838_v12 = vpop.f32.mrf.mxu1 }
 0x10d   :  { %v1851_v14 = vpop.f32.mrf.mxu2 }
 0x10e   :  { %v1864_v15 = vpop.f32.mrf.mxu3 }
 0x11e   :  { %v1875_v17 = vpop.f32.mrf.mxu0 }
 0x11f   :  { %v1876_v34 = vadd.f32 %v1875_v17, %v1863_v33 }
 0x121   :  { %v1888_v19 = vpop.f32.mrf.mxu1 }
 0x122   :  { %v1889_v35 = vadd.f32 %v1888_v19, %v1876_v34 }
 0x125   :  { %v1901_v21 = vpop.f32.mrf.mxu2 }
 0x126   :  { %v1914_v22 = vpop.f32.mrf.mxu3  ;;  %v1877_v23 = vpop.f32.mrf.mxu0  ;;  %v1902_v36 = vadd.f32 %v1901_v21, %v1889_v35 }
 0x128   :  { %v1915_v38 = vadd.f32 %v1914_v22, %v1902_v36 }
 0x129   :  { %v1890_v26 = vpop.f32.mrf.mxu1 }
 0x12d   :  { %v1903_v29 = vpop.f32.mrf.mxu2 }
 0x12e   :  { %v1916_v30 = vpop.f32.mrf.mxu3 }
 0x13e   :  { %v1927_v37 = vpop.f32.mrf.mxu0 }
 0x13f   :  { %v1928_v40 = vadd.f32 %v1927_v37, %v1915_v38 }
 0x141   :  { %v1940_v39 = vpop.f32.mrf.mxu1 }
 0x142   :  { %v1941_v44 = vadd.f32 %v1940_v39, %v1928_v40 }
 0x145   :  { %v1953_v41 = vpop.f32.mrf.mxu2 }
 0x146   :  { %v1966_v42 = vpop.f32.mrf.mxu3  ;;  %v1929_v43 = vpop.f32.mrf.mxu0  ;;  %v1954_v45 = vadd.f32 %v1953_v41, %v1941_v44 }
 0x148   :  { %v1967_v47 = vadd.f32 %v1966_v42, %v1954_v45 }
 0x149   :  { %v1942_v46 = vpop.f32.mrf.mxu1 }
 0x14d   :  { %v1955_v48 = vpop.f32.mrf.mxu2 }
 0x14e   :  { %v1968_v49 = vpop.f32.mrf.mxu3  ;;  %v1979_v50 = vpop.f32.mrf.mxu0 }
 0x14f   :  { %v1980_v51 = vadd.f32 %v1979_v50, %v1967_v47 }
 0x151   :  { %v1983_v52 = vmax.f32 %v1980_v51, 0.0 }
 0x153   :  { %v1984_v53 = vpack.c.bf16 %v1983_v52, %v1983_v52 }
 0x155   :  { %2061 = vmatmul.bf16.vlgmr.msra.gmra.mxu1 %v1984_v53 }
 0x156   :  { %v1981_v54 = vpop.f32.mrf.mxu0 }
 0x1d2   :  { %v2062_v56 = vpop.f32.mrf.mxu1 }
 0x1d3   :  { %v2063_v57 = vadd.f32 %v3108_v55, %v2062_v56 }
 0x1d5   :  { %v2066_v58 = vmax.f32 %v2063_v57, 0.0 }
 0x1d7   :  { %2068 = vst.msk [vmem:[#allocation2] sm:$0x3] %vm2067_vm1, %v2066_v58 }
 0x1d8   :  { %2079 = dma.vmem_to_hbm [thread:$0]  %s2075_s6, 32, %s2077_s9, [#allocation3]  }
 0x1da   :  { %v2064_v59 = vpop.f32.mrf.mxu1 }
 0x1db   :  { %3133 = dma.done.wait [#allocation3], 32  }
 0x1dc   :  { %3134 = vsyncadd [#allocation3], 4294967264 }
 0x1dd   :  { %2084 = vsyncpa [#allocation3], 1 }

</bundles_post_ra>
